<compile_context>
chip_gen: v7x
topology: tpu7x:2x2x1
jax: 0.10.0
libtpu: 0.0.40
codegen_flags: <defaults>
</compile_context>

<pallas_src>
import math
import functools

import jax
import jax.numpy as jnp
from jax import lax
from jax.experimental import pallas as pl
from jax.experimental.pallas import tpu as pltpu


def _mha_kernel(xq_ref, xk_ref, mask_ref,
                wq_ref, bq_ref, wk_ref, bk_ref, wv_ref, bv_ref,
                wo_ref, bo_ref,
                o_ref,
                q_scr, m_scr, l_scr, acc_scr,
                *, num_head, head_dim, scale):
    f32 = jnp.float32
    bf16 = jnp.bfloat16
    ki = pl.program_id(2)
    nk = pl.num_programs(2)

    # --- start of a new (batch, q-tile): project Q once, reset flash state ---
    @pl.when(ki == 0)
    def _():
        xq = xq_ref[0].astype(bf16)                                  # (TQ, D_in)
        for h in range(num_head):
            q = jnp.dot(xq, wq_ref[h], preferred_element_type=f32) + bq_ref[h]
            q_scr[h] = (q * scale).astype(bf16)                      # (TQ, HD)
        m_scr[...] = jnp.full(m_scr.shape, -jnp.inf, dtype=f32)
        l_scr[...] = jnp.zeros(l_scr.shape, dtype=f32)
        acc_scr[...] = jnp.zeros(acc_scr.shape, dtype=f32)

    # --- K/V projection + online-softmax update for this KV tile -------------
    xk = xk_ref[0].astype(bf16)                                      # (TK, D_in)
    msk = mask_ref[0, 0]                                             # (TQ, TK) int32
    neg_big = f32(-1000000000.0)

    for h in range(num_head):
        k = jnp.dot(xk, wk_ref[h], preferred_element_type=f32) + bk_ref[h]   # (TK,HD)
        v = jnp.dot(xk, wv_ref[h], preferred_element_type=f32) + bv_ref[h]   # (TK,HD)

        # scores = (q * scale) @ k^T   (contract head_dim)
        s = lax.dot_general(q_scr[h], k.astype(bf16),
                            (((1,), (1,)), ((), ())),
                            preferred_element_type=f32)              # (TQ, TK)
        s = jnp.where(msk == 0, neg_big, s)                          # masked_fill

        m_prev = m_scr[h]                                            # (TQ, 1)
        m_new = jnp.maximum(m_prev, jnp.max(s, axis=-1, keepdims=True))
        alpha = jnp.exp(m_prev - m_new)
        p = jnp.exp(s - m_new)                                       # (TQ, TK) f32
        l_scr[h] = alpha * l_scr[h] + jnp.sum(p, axis=-1, keepdims=True)
        acc_scr[h] = alpha * acc_scr[h] + jnp.dot(
            p.astype(bf16), v.astype(bf16), preferred_element_type=f32)
        m_scr[h] = m_new

    # TODO(synk): dropout on attention probabilities omitted (module in eval mode).

    # --- last KV tile: normalize and fuse the output projection --------------
    @pl.when(ki == nk - 1)
    def _():
        y = None
        for h in range(num_head):
            att = acc_scr[h] * pl.reciprocal(l_scr[h], approx=True)  # (TQ, HD) f32
            contrib = jnp.dot(att.astype(bf16), wo_ref[h],
                              preferred_element_type=f32)            # (TQ, D_in)
            y = contrib if y is None else y + contrib
        y = y + bo_ref[...]
        o_ref[0] = y.astype(o_ref.dtype)


def multi_head_attention(x, mask, params, *, num_head, max_tile=256):
    """x: (B, S, D_in) f32, mask: (B, 1, S, S), params: dict of f32 weights."""
    B, S, D_in = x.shape
    hidden = params["wq"].shape[1]
    head_dim = hidden // num_head

    # Sequence tiling (flash-style).  Tiles must respect the (8,128) rule, so
    # only tile when S is a multiple of 128; otherwise use the full sequence.
    if S % 128 == 0:
        TQ = min(S, max_tile)
        TK = min(S, max_tile)
    else:
        TQ = TK = S
    nq, nk = S // TQ, S // TK

    bf16 = jnp.bfloat16
    f32 = jnp.float32

    # Head-major weight layout prepared host-side (no lane slicing in-kernel);
    # bf16 matmul inputs, biases stay f32 (added after the f32-accum matmul).
    wq = params["wq"].reshape(D_in, num_head, head_dim).transpose(1, 0, 2).astype(bf16)
    wk = params["wk"].reshape(D_in, num_head, head_dim).transpose(1, 0, 2).astype(bf16)
    wv = params["wv"].reshape(D_in, num_head, head_dim).transpose(1, 0, 2).astype(bf16)
    wo = params["wo"].reshape(num_head, head_dim, D_in).astype(bf16)
    bq = params["bq"].reshape(num_head, 1, head_dim).astype(f32)
    bk = params["bk"].reshape(num_head, 1, head_dim).astype(f32)
    bv = params["bv"].reshape(num_head, 1, head_dim).astype(f32)
    bo = params["bo"].reshape(1, D_in).astype(f32)

    kernel = functools.partial(
        _mha_kernel, num_head=num_head, head_dim=head_dim,
        scale=1.0 / math.sqrt(head_dim))

    # Constant index maps -> these blocks are DMA'd once and stay resident.
    const3 = lambda shp: pl.BlockSpec(shp, lambda b, qi, ki: (0, 0, 0))

    return pl.pallas_call(
        kernel,
        out_shape=jax.ShapeDtypeStruct((B, S, D_in), x.dtype),
        grid_spec=pltpu.PrefetchScalarGridSpec(
            num_scalar_prefetch=0,
            grid=(B, nq, nk),
            in_specs=[
                pl.BlockSpec((1, TQ, D_in), lambda b, qi, ki: (b, qi, 0)),       # x (Q rows)
                pl.BlockSpec((1, TK, D_in), lambda b, qi, ki: (b, ki, 0)),       # x (K/V rows)
                pl.BlockSpec((1, 1, TQ, TK), lambda b, qi, ki: (b, 0, qi, ki)),  # mask tile
                const3((num_head, D_in, head_dim)),                              # wq
                const3((num_head, 1, head_dim)),                                 # bq
                const3((num_head, D_in, head_dim)),                              # wk
                const3((num_head, 1, head_dim)),                                 # bk
                const3((num_head, D_in, head_dim)),                              # wv
                const3((num_head, 1, head_dim)),                                 # bv
                const3((num_head, head_dim, D_in)),                              # wo
                pl.BlockSpec((1, D_in), lambda b, qi, ki: (0, 0)),               # bo
            ],
            out_specs=pl.BlockSpec((1, TQ, D_in), lambda b, qi, ki: (b, qi, 0)),
            scratch_shapes=[
                pltpu.VMEM((num_head, TQ, head_dim), bf16),   # scaled Q per head
                pltpu.VMEM((num_head, TQ, 1), f32),           # running max
                pltpu.VMEM((num_head, TQ, 1), f32),           # running denom
                pltpu.VMEM((num_head, TQ, head_dim), f32),    # running numerator
            ]),
        compiler_params=pltpu.CompilerParams(
            dimension_semantics=("parallel", "parallel", "arbitrary")),
    )(x, x, mask, wq, bq, wk, bk, wv, bv, wo, bo)


def _reference(x, mask, params, *, num_head):
    """Plain-JAX f32 reference mirroring the PyTorch forward (eval mode)."""
    B, S, D_in = x.shape
    hidden = params["wq"].shape[1]
    hd = hidden // num_head

    def split_heads(t):   # (B,S,H) -> (B,nh,S,hd)
        return t.reshape(B, S, num_head, hd).transpose(0, 2, 1, 3)

    q = split_heads(x @ params["wq"] + params["bq"])
    k = split_heads(x @ params["wk"] + params["bk"])
    v = split_heads(x @ params["wv"] + params["bv"])

    scores = jnp.einsum("bhqd,bhkd->bhqk", q, k) / math.sqrt(hd)
    scores = jnp.where(mask == 0, -1000000000.0, scores)
    scores = jax.nn.softmax(scores, axis=-1)
    out = jnp.einsum("bhqk,bhkd->bhqd", scores, v)
    out = out.transpose(0, 2, 1, 3).reshape(B, S, hidden)
    return out @ params["wo"] + params["bo"]


if __name__ == "__main__":
    B, S = 2, 8
    in_dim, hidden_dim, num_head = 32, 32, 4

    key = jax.random.PRNGKey(0)
    ks = jax.random.split(key, 10)
    init = lambda k, shp, fan_in: (jax.random.uniform(
        k, shp, jnp.float32, -1.0, 1.0) / math.sqrt(fan_in))

    # Linear weights stored pre-transposed as (in_features, out_features).
    params = {
        "wq": init(ks[0], (in_dim, hidden_dim), in_dim),
        "bq": init(ks[1], (hidden_dim,), in_dim),
        "wk": init(ks[2], (in_dim, hidden_dim), in_dim),
        "bk": init(ks[3], (hidden_dim,), in_dim),
        "wv": init(ks[4], (in_dim, hidden_dim), in_dim),
        "bv": init(ks[5], (hidden_dim,), in_dim),
        "wo": init(ks[6], (hidden_dim, in_dim), hidden_dim),
        "bo": init(ks[7], (in_dim,), hidden_dim),
    }

    x = jax.random.normal(ks[8], (B, S, in_dim), jnp.float32)

    # Causal mask, shape (B, 1, S, S); zeros mark positions to block.
    causal = jnp.tril(jnp.ones((S, S), jnp.int32))
    mask = jnp.broadcast_to(causal[None, None, :, :], (B, 1, S, S))

    out = multi_head_attention(x, mask, params, num_head=num_head)
    out = jax.block_until_ready(out)

    ref = _reference(x, mask, params, num_head=num_head)
    assert out.shape == (B, S, in_dim)
    # Tolerance loosened vs the pure-f32 version: MXU inputs are bf16
    # (f32 accumulation) and the softmax reciprocal uses the approx EUP path.
    assert jnp.allclose(out, ref, atol=2e-2, rtol=2e-2), "mismatch vs reference"

    print("KERNEL_OK")
</pallas_src>

<mosaic_0001>
module attributes {stable_mosaic.version = 11 : i64} {
  func.func @_mha_kernel(%arg0: i32, %arg1: i32, %arg2: i32, %arg3: memref<1x8x32xf32, #tpu.memory_space<vmem>>, %arg4: memref<1x8x32xf32, #tpu.memory_space<vmem>>, %arg5: memref<1x1x8x8xi32, #tpu.memory_space<vmem>>, %arg6: memref<4x32x8xbf16, #tpu.memory_space<vmem>>, %arg7: memref<4x1x8xf32, #tpu.memory_space<vmem>>, %arg8: memref<4x32x8xbf16, #tpu.memory_space<vmem>>, %arg9: memref<4x1x8xf32, #tpu.memory_space<vmem>>, %arg10: memref<4x32x8xbf16, #tpu.memory_space<vmem>>, %arg11: memref<4x1x8xf32, #tpu.memory_space<vmem>>, %arg12: memref<4x8x32xbf16, #tpu.memory_space<vmem>>, %arg13: memref<1x32xf32, #tpu.memory_space<vmem>>, %arg14: memref<1x8x32xf32, #tpu.memory_space<vmem>>, %arg15: memref<4x8x8xbf16, #tpu.memory_space<vmem>>, %arg16: memref<4x8x1xf32, #tpu.memory_space<vmem>>, %arg17: memref<4x8x1xf32, #tpu.memory_space<vmem>>, %arg18: memref<4x8x8xf32, #tpu.memory_space<vmem>>) attributes {dimension_semantics = [#tpu.dimension_semantics<parallel>, #tpu.dimension_semantics<parallel>, #tpu.dimension_semantics<arbitrary>], iteration_bounds = array<i64: 2, 1, 1>, scalar_prefetch = 0 : i64, scratch_operands = 4 : i64, tpu.core_type = #tpu.core_type<tc>, window_params = [{transform_indices = @transform_0, window_bounds = array<i64: 1, 8, 32>}, {transform_indices = @transform_1, window_bounds = array<i64: 1, 8, 32>}, {transform_indices = @transform_2, window_bounds = array<i64: 1, 1, 8, 8>}, {pipeline_mode = #tpu.pipeline_mode<synchronous>, transform_indices = @transform_3, window_bounds = array<i64: 4, 32, 8>}, {pipeline_mode = #tpu.pipeline_mode<synchronous>, transform_indices = @transform_4, window_bounds = array<i64: 4, 1, 8>}, {pipeline_mode = #tpu.pipeline_mode<synchronous>, transform_indices = @transform_5, window_bounds = array<i64: 4, 32, 8>}, {pipeline_mode = #tpu.pipeline_mode<synchronous>, transform_indices = @transform_6, window_bounds = array<i64: 4, 1, 8>}, {pipeline_mode = #tpu.pipeline_mode<synchronous>, transform_indices = @transform_7, window_bounds = array<i64: 4, 32, 8>}, {pipeline_mode = #tpu.pipeline_mode<synchronous>, transform_indices = @transform_8, window_bounds = array<i64: 4, 1, 8>}, {pipeline_mode = #tpu.pipeline_mode<synchronous>, transform_indices = @transform_9, window_bounds = array<i64: 4, 8, 32>}, {pipeline_mode = #tpu.pipeline_mode<synchronous>, transform_indices = @transform_10, window_bounds = array<i64: 1, 32>}, {transform_indices = @transform_11, window_bounds = array<i64: 1, 8, 32>}]} {
    %c0_i32 = arith.constant 0 : i32
    %0 = arith.cmpi eq, %arg2, %c0_i32 : i32
    %1 = arith.extui %0 : i1 to i32
    %c0_i32_0 = arith.constant 0 : i32
    %2 = arith.cmpi ne, %1, %c0_i32_0 : i32
    scf.if %2 {
      %c0_169 = arith.constant 0 : index
      %c0_170 = arith.constant 0 : index
      %c0_171 = arith.constant 0 : index
      %231 = vector.load %arg3[%c0_169, %c0_170, %c0_171] : memref<1x8x32xf32, #tpu.memory_space<vmem>>, vector<1x8x32xf32>
      %232 = vector.shape_cast %231 : vector<1x8x32xf32> to vector<8x32xf32>
      %233 = arith.truncf %232 : vector<8x32xf32> to vector<8x32xbf16>
      %c0_172 = arith.constant 0 : index
      %c0_173 = arith.constant 0 : index
      %c0_174 = arith.constant 0 : index
      %234 = vector.load %arg6[%c0_172, %c0_173, %c0_174] : memref<4x32x8xbf16, #tpu.memory_space<vmem>>, vector<1x32x8xbf16>
      %235 = vector.shape_cast %234 : vector<1x32x8xbf16> to vector<32x8xbf16>
      %cst_175 = arith.constant dense<0.000000e+00> : vector<8x8xf32>
      %236 = tpu.matmul %233, %235, %cst_175 {dimension_numbers = #tpu.dot_dimension_numbers<[1], [0], [0], [1], [0, 0, 1, 1], [], []>} : vector<8x32xbf16>, vector<32x8xbf16>, vector<8x8xf32> -> vector<8x8xf32>
      %c0_176 = arith.constant 0 : index
      %c0_177 = arith.constant 0 : index
      %c0_178 = arith.constant 0 : index
      %237 = vector.load %arg7[%c0_176, %c0_177, %c0_178] : memref<4x1x8xf32, #tpu.memory_space<vmem>>, vector<1x1x8xf32>
      %238 = vector.shape_cast %237 : vector<1x1x8xf32> to vector<1x8xf32>
      %239 = vector.broadcast %238 : vector<1x8xf32> to vector<8x8xf32>
      %240 = arith.addf %236, %239 : vector<8x8xf32>
      %cst_179 = arith.constant 0.353553385 : f32
      %241 = vector.broadcast %cst_179 : f32 to vector<8x8xf32>
      %242 = arith.mulf %240, %241 : vector<8x8xf32>
      %243 = arith.truncf %242 : vector<8x8xf32> to vector<8x8xbf16>
      %c0_180 = arith.constant 0 : index
      %c0_181 = arith.constant 0 : index
      %c0_182 = arith.constant 0 : index
      %244 = vector.load %arg15[%c0_180, %c0_181, %c0_182] : memref<4x8x8xbf16, #tpu.memory_space<vmem>>, vector<1x8x8xbf16>
      %245 = vector.shape_cast %244 : vector<1x8x8xbf16> to vector<8x8xbf16>
      %246 = vector.shape_cast %243 : vector<8x8xbf16> to vector<1x8x8xbf16>
      tpu.vector_store %arg15[%c0_180, %c0_181, %c0_182], %246 {strides = array<i32>} : memref<4x8x8xbf16, #tpu.memory_space<vmem>>, vector<1x8x8xbf16>,
      %c1_183 = arith.constant 1 : index
      %c0_184 = arith.constant 0 : index
      %c0_185 = arith.constant 0 : index
      %247 = vector.load %arg6[%c1_183, %c0_184, %c0_185] : memref<4x32x8xbf16, #tpu.memory_space<vmem>>, vector<1x32x8xbf16>
      %248 = vector.shape_cast %247 : vector<1x32x8xbf16> to vector<32x8xbf16>
      %cst_186 = arith.constant dense<0.000000e+00> : vector<8x8xf32>
      %249 = tpu.matmul %233, %248, %cst_186 {dimension_numbers = #tpu.dot_dimension_numbers<[1], [0], [0], [1], [0, 0, 1, 1], [], []>} : vector<8x32xbf16>, vector<32x8xbf16>, vector<8x8xf32> -> vector<8x8xf32>
      %c1_187 = arith.constant 1 : index
      %c0_188 = arith.constant 0 : index
      %c0_189 = arith.constant 0 : index
      %250 = vector.load %arg7[%c1_187, %c0_188, %c0_189] : memref<4x1x8xf32, #tpu.memory_space<vmem>>, vector<1x1x8xf32>
      %251 = vector.shape_cast %250 : vector<1x1x8xf32> to vector<1x8xf32>
      %252 = vector.broadcast %251 : vector<1x8xf32> to vector<8x8xf32>
      %253 = arith.addf %249, %252 : vector<8x8xf32>
      %cst_190 = arith.constant 0.353553385 : f32
      %254 = vector.broadcast %cst_190 : f32 to vector<8x8xf32>
      %255 = arith.mulf %253, %254 : vector<8x8xf32>
      %256 = arith.truncf %255 : vector<8x8xf32> to vector<8x8xbf16>
      %c1_191 = arith.constant 1 : index
      %c0_192 = arith.constant 0 : index
      %c0_193 = arith.constant 0 : index
      %257 = vector.load %arg15[%c1_191, %c0_192, %c0_193] : memref<4x8x8xbf16, #tpu.memory_space<vmem>>, vector<1x8x8xbf16>
      %258 = vector.shape_cast %257 : vector<1x8x8xbf16> to vector<8x8xbf16>
      %259 = vector.shape_cast %256 : vector<8x8xbf16> to vector<1x8x8xbf16>
      tpu.vector_store %arg15[%c1_191, %c0_192, %c0_193], %259 {strides = array<i32>} : memref<4x8x8xbf16, #tpu.memory_space<vmem>>, vector<1x8x8xbf16>,
      %c2_194 = arith.constant 2 : index
      %c0_195 = arith.constant 0 : index
      %c0_196 = arith.constant 0 : index
      %260 = vector.load %arg6[%c2_194, %c0_195, %c0_196] : memref<4x32x8xbf16, #tpu.memory_space<vmem>>, vector<1x32x8xbf16>
      %261 = vector.shape_cast %260 : vector<1x32x8xbf16> to vector<32x8xbf16>
      %cst_197 = arith.constant dense<0.000000e+00> : vector<8x8xf32>
      %262 = tpu.matmul %233, %261, %cst_197 {dimension_numbers = #tpu.dot_dimension_numbers<[1], [0], [0], [1], [0, 0, 1, 1], [], []>} : vector<8x32xbf16>, vector<32x8xbf16>, vector<8x8xf32> -> vector<8x8xf32>
      %c2_198 = arith.constant 2 : index
      %c0_199 = arith.constant 0 : index
      %c0_200 = arith.constant 0 : index
      %263 = vector.load %arg7[%c2_198, %c0_199, %c0_200] : memref<4x1x8xf32, #tpu.memory_space<vmem>>, vector<1x1x8xf32>
      %264 = vector.shape_cast %263 : vector<1x1x8xf32> to vector<1x8xf32>
      %265 = vector.broadcast %264 : vector<1x8xf32> to vector<8x8xf32>
      %266 = arith.addf %262, %265 : vector<8x8xf32>
      %cst_201 = arith.constant 0.353553385 : f32
      %267 = vector.broadcast %cst_201 : f32 to vector<8x8xf32>
      %268 = arith.mulf %266, %267 : vector<8x8xf32>
      %269 = arith.truncf %268 : vector<8x8xf32> to vector<8x8xbf16>
      %c2_202 = arith.constant 2 : index
      %c0_203 = arith.constant 0 : index
      %c0_204 = arith.constant 0 : index
      %270 = vector.load %arg15[%c2_202, %c0_203, %c0_204] : memref<4x8x8xbf16, #tpu.memory_space<vmem>>, vector<1x8x8xbf16>
      %271 = vector.shape_cast %270 : vector<1x8x8xbf16> to vector<8x8xbf16>
      %272 = vector.shape_cast %269 : vector<8x8xbf16> to vector<1x8x8xbf16>
      tpu.vector_store %arg15[%c2_202, %c0_203, %c0_204], %272 {strides = array<i32>} : memref<4x8x8xbf16, #tpu.memory_space<vmem>>, vector<1x8x8xbf16>,
      %c3_205 = arith.constant 3 : index
      %c0_206 = arith.constant 0 : index
      %c0_207 = arith.constant 0 : index
      %273 = vector.load %arg6[%c3_205, %c0_206, %c0_207] : memref<4x32x8xbf16, #tpu.memory_space<vmem>>, vector<1x32x8xbf16>
      %274 = vector.shape_cast %273 : vector<1x32x8xbf16> to vector<32x8xbf16>
      %cst_208 = arith.constant dense<0.000000e+00> : vector<8x8xf32>
      %275 = tpu.matmul %233, %274, %cst_208 {dimension_numbers = #tpu.dot_dimension_numbers<[1], [0], [0], [1], [0, 0, 1, 1], [], []>} : vector<8x32xbf16>, vector<32x8xbf16>, vector<8x8xf32> -> vector<8x8xf32>
      %c3_209 = arith.constant 3 : index
      %c0_210 = arith.constant 0 : index
      %c0_211 = arith.constant 0 : index
      %276 = vector.load %arg7[%c3_209, %c0_210, %c0_211] : memref<4x1x8xf32, #tpu.memory_space<vmem>>, vector<1x1x8xf32>
      %277 = vector.shape_cast %276 : vector<1x1x8xf32> to vector<1x8xf32>
      %278 = vector.broadcast %277 : vector<1x8xf32> to vector<8x8xf32>
      %279 = arith.addf %275, %278 : vector<8x8xf32>
      %cst_212 = arith.constant 0.353553385 : f32
      %280 = vector.broadcast %cst_212 : f32 to vector<8x8xf32>
      %281 = arith.mulf %279, %280 : vector<8x8xf32>
      %282 = arith.truncf %281 : vector<8x8xf32> to vector<8x8xbf16>
      %c3_213 = arith.constant 3 : index
      %c0_214 = arith.constant 0 : index
      %c0_215 = arith.constant 0 : index
      %283 = vector.load %arg15[%c3_213, %c0_214, %c0_215] : memref<4x8x8xbf16, #tpu.memory_space<vmem>>, vector<1x8x8xbf16>
      %284 = vector.shape_cast %283 : vector<1x8x8xbf16> to vector<8x8xbf16>
      %285 = vector.shape_cast %282 : vector<8x8xbf16> to vector<1x8x8xbf16>
      tpu.vector_store %arg15[%c3_213, %c0_214, %c0_215], %285 {strides = array<i32>} : memref<4x8x8xbf16, #tpu.memory_space<vmem>>, vector<1x8x8xbf16>,
      %cst_216 = arith.constant 0xFF800000 : f32
      %286 = vector.broadcast %cst_216 : f32 to vector<4x8x1xf32>
      %c0_217 = arith.constant 0 : index
      %c0_218 = arith.constant 0 : index
      %c0_219 = arith.constant 0 : index
      %287 = vector.load %arg16[%c0_217, %c0_218, %c0_219] : memref<4x8x1xf32, #tpu.memory_space<vmem>>, vector<4x8x1xf32>
      tpu.vector_store %arg16[%c0_217, %c0_218, %c0_219], %286 {strides = array<i32>} : memref<4x8x1xf32, #tpu.memory_space<vmem>>, vector<4x8x1xf32>,
      %cst_220 = arith.constant 0.000000e+00 : f32
      %288 = vector.broadcast %cst_220 : f32 to vector<4x8x1xf32>
      %c0_221 = arith.constant 0 : index
      %c0_222 = arith.constant 0 : index
      %c0_223 = arith.constant 0 : index
      %289 = vector.load %arg17[%c0_221, %c0_222, %c0_223] : memref<4x8x1xf32, #tpu.memory_space<vmem>>, vector<4x8x1xf32>
      tpu.vector_store %arg17[%c0_221, %c0_222, %c0_223], %288 {strides = array<i32>} : memref<4x8x1xf32, #tpu.memory_space<vmem>>, vector<4x8x1xf32>,
      %cst_224 = arith.constant 0.000000e+00 : f32
      %290 = vector.broadcast %cst_224 : f32 to vector<4x8x8xf32>
      %c0_225 = arith.constant 0 : index
      %c0_226 = arith.constant 0 : index
      %c0_227 = arith.constant 0 : index
      %291 = vector.load %arg18[%c0_225, %c0_226, %c0_227] : memref<4x8x8xf32, #tpu.memory_space<vmem>>, vector<4x8x8xf32>
      tpu.vector_store %arg18[%c0_225, %c0_226, %c0_227], %290 {strides = array<i32>} : memref<4x8x8xf32, #tpu.memory_space<vmem>>, vector<4x8x8xf32>,
    } else {
    }
    %c0 = arith.constant 0 : index
    %c0_1 = arith.constant 0 : index
    %c0_2 = arith.constant 0 : index
    %3 = vector.load %arg4[%c0, %c0_1, %c0_2] : memref<1x8x32xf32, #tpu.memory_space<vmem>>, vector<1x8x32xf32>
    %4 = vector.shape_cast %3 : vector<1x8x32xf32> to vector<8x32xf32>
    %5 = arith.truncf %4 : vector<8x32xf32> to vector<8x32xbf16>
    %c0_3 = arith.constant 0 : index
    %c0_4 = arith.constant 0 : index
    %c0_5 = arith.constant 0 : index
    %c0_6 = arith.constant 0 : index
    %6 = vector.load %arg5[%c0_3, %c0_4, %c0_5, %c0_6] : memref<1x1x8x8xi32, #tpu.memory_space<vmem>>, vector<1x1x8x8xi32>
    %7 = vector.shape_cast %6 : vector<1x1x8x8xi32> to vector<8x8xi32>
    %c0_7 = arith.constant 0 : index
    %c0_8 = arith.constant 0 : index
    %c0_9 = arith.constant 0 : index
    %8 = vector.load %arg8[%c0_7, %c0_8, %c0_9] : memref<4x32x8xbf16, #tpu.memory_space<vmem>>, vector<1x32x8xbf16>
    %9 = vector.shape_cast %8 : vector<1x32x8xbf16> to vector<32x8xbf16>
    %cst = arith.constant dense<0.000000e+00> : vector<8x8xf32>
    %10 = tpu.matmul %5, %9, %cst {dimension_numbers = #tpu.dot_dimension_numbers<[1], [0], [0], [1], [0, 0, 1, 1], [], []>} : vector<8x32xbf16>, vector<32x8xbf16>, vector<8x8xf32> -> vector<8x8xf32>
    %c0_10 = arith.constant 0 : index
    %c0_11 = arith.constant 0 : index
    %c0_12 = arith.constant 0 : index
    %11 = vector.load %arg9[%c0_10, %c0_11, %c0_12] : memref<4x1x8xf32, #tpu.memory_space<vmem>>, vector<1x1x8xf32>
    %12 = vector.shape_cast %11 : vector<1x1x8xf32> to vector<1x8xf32>
    %13 = vector.broadcast %12 : vector<1x8xf32> to vector<8x8xf32>
    %14 = arith.addf %10, %13 : vector<8x8xf32>
    %c0_13 = arith.constant 0 : index
    %c0_14 = arith.constant 0 : index
    %c0_15 = arith.constant 0 : index
    %15 = vector.load %arg10[%c0_13, %c0_14, %c0_15] : memref<4x32x8xbf16, #tpu.memory_space<vmem>>, vector<1x32x8xbf16>
    %16 = vector.shape_cast %15 : vector<1x32x8xbf16> to vector<32x8xbf16>
    %cst_16 = arith.constant dense<0.000000e+00> : vector<8x8xf32>
    %17 = tpu.matmul %5, %16, %cst_16 {dimension_numbers = #tpu.dot_dimension_numbers<[1], [0], [0], [1], [0, 0, 1, 1], [], []>} : vector<8x32xbf16>, vector<32x8xbf16>, vector<8x8xf32> -> vector<8x8xf32>
    %c0_17 = arith.constant 0 : index
    %c0_18 = arith.constant 0 : index
    %c0_19 = arith.constant 0 : index
    %18 = vector.load %arg11[%c0_17, %c0_18, %c0_19] : memref<4x1x8xf32, #tpu.memory_space<vmem>>, vector<1x1x8xf32>
    %19 = vector.shape_cast %18 : vector<1x1x8xf32> to vector<1x8xf32>
    %20 = vector.broadcast %19 : vector<1x8xf32> to vector<8x8xf32>
    %21 = arith.addf %17, %20 : vector<8x8xf32>
    %c0_20 = arith.constant 0 : index
    %c0_21 = arith.constant 0 : index
    %c0_22 = arith.constant 0 : index
    %22 = vector.load %arg15[%c0_20, %c0_21, %c0_22] : memref<4x8x8xbf16, #tpu.memory_space<vmem>>, vector<1x8x8xbf16>
    %23 = vector.shape_cast %22 : vector<1x8x8xbf16> to vector<8x8xbf16>
    %24 = arith.truncf %14 : vector<8x8xf32> to vector<8x8xbf16>
    %cst_23 = arith.constant dense<0.000000e+00> : vector<8x8xf32>
    %25 = tpu.matmul %23, %24, %cst_23 {dimension_numbers = #tpu.dot_dimension_numbers<[1], [1], [0], [0], [0, 0, 1, 0], [], []>} : vector<8x8xbf16>, vector<8x8xbf16>, vector<8x8xf32> -> vector<8x8xf32>
    %c0_i32_24 = arith.constant 0 : i32
    %26 = vector.broadcast %c0_i32_24 : i32 to vector<8x8xi32>
    %27 = arith.cmpi eq, %7, %26 : vector<8x8xi32>
    %cst_25 = arith.constant -1.000000e+09 : f32
    %28 = vector.broadcast %cst_25 : f32 to vector<8x8xf32>
    %29 = arith.select %27, %28, %25 : vector<8x8xi1>, vector<8x8xf32>
    %c0_26 = arith.constant 0 : index
    %c0_27 = arith.constant 0 : index
    %c0_28 = arith.constant 0 : index
    %30 = vector.load %arg16[%c0_26, %c0_27, %c0_28] : memref<4x8x1xf32, #tpu.memory_space<vmem>>, vector<1x8x1xf32>
    %31 = vector.shape_cast %30 : vector<1x8x1xf32> to vector<8x1xf32>
    %cst_29 = arith.constant dense<0xFF800000> : vector<8xf32>
    %32 = vector.multi_reduction <maximumf>, %29, %cst_29 [1] : vector<8x8xf32> to vector<8xf32>
    %33 = vector.shape_cast %32 : vector<8xf32> to vector<8x1xf32>
    %34 = arith.maximumf %31, %33 : vector<8x1xf32>
    %35 = arith.subf %31, %34 : vector<8x1xf32>
    %36 = math.exp %35 : vector<8x1xf32>
    %37 = vector.broadcast %34 : vector<8x1xf32> to vector<8x8xf32>
    %38 = arith.subf %29, %37 : vector<8x8xf32>
    %39 = math.exp %38 : vector<8x8xf32>
    %c0_30 = arith.constant 0 : index
    %c0_31 = arith.constant 0 : index
    %c0_32 = arith.constant 0 : index
    %40 = vector.load %arg17[%c0_30, %c0_31, %c0_32] : memref<4x8x1xf32, #tpu.memory_space<vmem>>, vector<1x8x1xf32>
    %41 = vector.shape_cast %40 : vector<1x8x1xf32> to vector<8x1xf32>
    %42 = arith.mulf %36, %41 : vector<8x1xf32>
    %cst_33 = arith.constant dense<0.000000e+00> : vector<8xf32>
    %43 = vector.multi_reduction <add>, %39, %cst_33 [1] : vector<8x8xf32> to vector<8xf32>
    %44 = vector.shape_cast %43 : vector<8xf32> to vector<8x1xf32>
    %45 = arith.addf %42, %44 : vector<8x1xf32>
    %c0_34 = arith.constant 0 : index
    %c0_35 = arith.constant 0 : index
    %c0_36 = arith.constant 0 : index
    %46 = vector.load %arg17[%c0_34, %c0_35, %c0_36] : memref<4x8x1xf32, #tpu.memory_space<vmem>>, vector<1x8x1xf32>
    %47 = vector.shape_cast %46 : vector<1x8x1xf32> to vector<8x1xf32>
    %48 = vector.shape_cast %45 : vector<8x1xf32> to vector<1x8x1xf32>
    tpu.vector_store %arg17[%c0_34, %c0_35, %c0_36], %48 {strides = array<i32>} : memref<4x8x1xf32, #tpu.memory_space<vmem>>, vector<1x8x1xf32>,
    %c0_37 = arith.constant 0 : index
    %c0_38 = arith.constant 0 : index
    %c0_39 = arith.constant 0 : index
    %49 = vector.load %arg18[%c0_37, %c0_38, %c0_39] : memref<4x8x8xf32, #tpu.memory_space<vmem>>, vector<1x8x8xf32>
    %50 = vector.shape_cast %49 : vector<1x8x8xf32> to vector<8x8xf32>
    %51 = vector.broadcast %36 : vector<8x1xf32> to vector<8x8xf32>
    %52 = arith.mulf %51, %50 : vector<8x8xf32>
    %53 = arith.truncf %39 : vector<8x8xf32> to vector<8x8xbf16>
    %54 = arith.truncf %21 : vector<8x8xf32> to vector<8x8xbf16>
    %cst_40 = arith.constant dense<0.000000e+00> : vector<8x8xf32>
    %55 = tpu.matmul %53, %54, %cst_40 {dimension_numbers = #tpu.dot_dimension_numbers<[1], [0], [0], [1], [0, 0, 1, 1], [], []>} : vector<8x8xbf16>, vector<8x8xbf16>, vector<8x8xf32> -> vector<8x8xf32>
    %56 = arith.addf %52, %55 : vector<8x8xf32>
    %c0_41 = arith.constant 0 : index
    %c0_42 = arith.constant 0 : index
    %c0_43 = arith.constant 0 : index
    %57 = vector.load %arg18[%c0_41, %c0_42, %c0_43] : memref<4x8x8xf32, #tpu.memory_space<vmem>>, vector<1x8x8xf32>
    %58 = vector.shape_cast %57 : vector<1x8x8xf32> to vector<8x8xf32>
    %59 = vector.shape_cast %56 : vector<8x8xf32> to vector<1x8x8xf32>
    tpu.vector_store %arg18[%c0_41, %c0_42, %c0_43], %59 {strides = array<i32>} : memref<4x8x8xf32, #tpu.memory_space<vmem>>, vector<1x8x8xf32>,
    %c0_44 = arith.constant 0 : index
    %c0_45 = arith.constant 0 : index
    %c0_46 = arith.constant 0 : index
    %60 = vector.load %arg16[%c0_44, %c0_45, %c0_46] : memref<4x8x1xf32, #tpu.memory_space<vmem>>, vector<1x8x1xf32>
    %61 = vector.shape_cast %60 : vector<1x8x1xf32> to vector<8x1xf32>
    %62 = vector.shape_cast %34 : vector<8x1xf32> to vector<1x8x1xf32>
    tpu.vector_store %arg16[%c0_44, %c0_45, %c0_46], %62 {strides = array<i32>} : memref<4x8x1xf32, #tpu.memory_space<vmem>>, vector<1x8x1xf32>,
    %c1 = arith.constant 1 : index
    %c0_47 = arith.constant 0 : index
    %c0_48 = arith.constant 0 : index
    %63 = vector.load %arg8[%c1, %c0_47, %c0_48] : memref<4x32x8xbf16, #tpu.memory_space<vmem>>, vector<1x32x8xbf16>
    %64 = vector.shape_cast %63 : vector<1x32x8xbf16> to vector<32x8xbf16>
    %cst_49 = arith.constant dense<0.000000e+00> : vector<8x8xf32>
    %65 = tpu.matmul %5, %64, %cst_49 {dimension_numbers = #tpu.dot_dimension_numbers<[1], [0], [0], [1], [0, 0, 1, 1], [], []>} : vector<8x32xbf16>, vector<32x8xbf16>, vector<8x8xf32> -> vector<8x8xf32>
    %c1_50 = arith.constant 1 : index
    %c0_51 = arith.constant 0 : index
    %c0_52 = arith.constant 0 : index
    %66 = vector.load %arg9[%c1_50, %c0_51, %c0_52] : memref<4x1x8xf32, #tpu.memory_space<vmem>>, vector<1x1x8xf32>
    %67 = vector.shape_cast %66 : vector<1x1x8xf32> to vector<1x8xf32>
    %68 = vector.broadcast %67 : vector<1x8xf32> to vector<8x8xf32>
    %69 = arith.addf %65, %68 : vector<8x8xf32>
    %c1_53 = arith.constant 1 : index
    %c0_54 = arith.constant 0 : index
    %c0_55 = arith.constant 0 : index
    %70 = vector.load %arg10[%c1_53, %c0_54, %c0_55] : memref<4x32x8xbf16, #tpu.memory_space<vmem>>, vector<1x32x8xbf16>
    %71 = vector.shape_cast %70 : vector<1x32x8xbf16> to vector<32x8xbf16>
    %cst_56 = arith.constant dense<0.000000e+00> : vector<8x8xf32>
    %72 = tpu.matmul %5, %71, %cst_56 {dimension_numbers = #tpu.dot_dimension_numbers<[1], [0], [0], [1], [0, 0, 1, 1], [], []>} : vector<8x32xbf16>, vector<32x8xbf16>, vector<8x8xf32> -> vector<8x8xf32>
    %c1_57 = arith.constant 1 : index
    %c0_58 = arith.constant 0 : index
    %c0_59 = arith.constant 0 : index
    %73 = vector.load %arg11[%c1_57, %c0_58, %c0_59] : memref<4x1x8xf32, #tpu.memory_space<vmem>>, vector<1x1x8xf32>
    %74 = vector.shape_cast %73 : vector<1x1x8xf32> to vector<1x8xf32>
    %75 = vector.broadcast %74 : vector<1x8xf32> to vector<8x8xf32>
    %76 = arith.addf %72, %75 : vector<8x8xf32>
    %c1_60 = arith.constant 1 : index
    %c0_61 = arith.constant 0 : index
    %c0_62 = arith.constant 0 : index
    %77 = vector.load %arg15[%c1_60, %c0_61, %c0_62] : memref<4x8x8xbf16, #tpu.memory_space<vmem>>, vector<1x8x8xbf16>
    %78 = vector.shape_cast %77 : vector<1x8x8xbf16> to vector<8x8xbf16>
    %79 = arith.truncf %69 : vector<8x8xf32> to vector<8x8xbf16>
    %cst_63 = arith.constant dense<0.000000e+00> : vector<8x8xf32>
    %80 = tpu.matmul %78, %79, %cst_63 {dimension_numbers = #tpu.dot_dimension_numbers<[1], [1], [0], [0], [0, 0, 1, 0], [], []>} : vector<8x8xbf16>, vector<8x8xbf16>, vector<8x8xf32> -> vector<8x8xf32>
    %c0_i32_64 = arith.constant 0 : i32
    %81 = vector.broadcast %c0_i32_64 : i32 to vector<8x8xi32>
    %82 = arith.cmpi eq, %7, %81 : vector<8x8xi32>
    %cst_65 = arith.constant -1.000000e+09 : f32
    %83 = vector.broadcast %cst_65 : f32 to vector<8x8xf32>
    %84 = arith.select %82, %83, %80 : vector<8x8xi1>, vector<8x8xf32>
    %c1_66 = arith.constant 1 : index
    %c0_67 = arith.constant 0 : index
    %c0_68 = arith.constant 0 : index
    %85 = vector.load %arg16[%c1_66, %c0_67, %c0_68] : memref<4x8x1xf32, #tpu.memory_space<vmem>>, vector<1x8x1xf32>
    %86 = vector.shape_cast %85 : vector<1x8x1xf32> to vector<8x1xf32>
    %cst_69 = arith.constant dense<0xFF800000> : vector<8xf32>
    %87 = vector.multi_reduction <maximumf>, %84, %cst_69 [1] : vector<8x8xf32> to vector<8xf32>
    %88 = vector.shape_cast %87 : vector<8xf32> to vector<8x1xf32>
    %89 = arith.maximumf %86, %88 : vector<8x1xf32>
    %90 = arith.subf %86, %89 : vector<8x1xf32>
    %91 = math.exp %90 : vector<8x1xf32>
    %92 = vector.broadcast %89 : vector<8x1xf32> to vector<8x8xf32>
    %93 = arith.subf %84, %92 : vector<8x8xf32>
    %94 = math.exp %93 : vector<8x8xf32>
    %c1_70 = arith.constant 1 : index
    %c0_71 = arith.constant 0 : index
    %c0_72 = arith.constant 0 : index
    %95 = vector.load %arg17[%c1_70, %c0_71, %c0_72] : memref<4x8x1xf32, #tpu.memory_space<vmem>>, vector<1x8x1xf32>
    %96 = vector.shape_cast %95 : vector<1x8x1xf32> to vector<8x1xf32>
    %97 = arith.mulf %91, %96 : vector<8x1xf32>
    %cst_73 = arith.constant dense<0.000000e+00> : vector<8xf32>
    %98 = vector.multi_reduction <add>, %94, %cst_73 [1] : vector<8x8xf32> to vector<8xf32>
    %99 = vector.shape_cast %98 : vector<8xf32> to vector<8x1xf32>
    %100 = arith.addf %97, %99 : vector<8x1xf32>
    %c1_74 = arith.constant 1 : index
    %c0_75 = arith.constant 0 : index
    %c0_76 = arith.constant 0 : index
    %101 = vector.load %arg17[%c1_74, %c0_75, %c0_76] : memref<4x8x1xf32, #tpu.memory_space<vmem>>, vector<1x8x1xf32>
    %102 = vector.shape_cast %101 : vector<1x8x1xf32> to vector<8x1xf32>
    %103 = vector.shape_cast %100 : vector<8x1xf32> to vector<1x8x1xf32>
    tpu.vector_store %arg17[%c1_74, %c0_75, %c0_76], %103 {strides = array<i32>} : memref<4x8x1xf32, #tpu.memory_space<vmem>>, vector<1x8x1xf32>,
    %c1_77 = arith.constant 1 : index
    %c0_78 = arith.constant 0 : index
    %c0_79 = arith.constant 0 : index
    %104 = vector.load %arg18[%c1_77, %c0_78, %c0_79] : memref<4x8x8xf32, #tpu.memory_space<vmem>>, vector<1x8x8xf32>
    %105 = vector.shape_cast %104 : vector<1x8x8xf32> to vector<8x8xf32>
    %106 = vector.broadcast %91 : vector<8x1xf32> to vector<8x8xf32>
    %107 = arith.mulf %106, %105 : vector<8x8xf32>
    %108 = arith.truncf %94 : vector<8x8xf32> to vector<8x8xbf16>
    %109 = arith.truncf %76 : vector<8x8xf32> to vector<8x8xbf16>
    %cst_80 = arith.constant dense<0.000000e+00> : vector<8x8xf32>
    %110 = tpu.matmul %108, %109, %cst_80 {dimension_numbers = #tpu.dot_dimension_numbers<[1], [0], [0], [1], [0, 0, 1, 1], [], []>} : vector<8x8xbf16>, vector<8x8xbf16>, vector<8x8xf32> -> vector<8x8xf32>
    %111 = arith.addf %107, %110 : vector<8x8xf32>
    %c1_81 = arith.constant 1 : index
    %c0_82 = arith.constant 0 : index
    %c0_83 = arith.constant 0 : index
    %112 = vector.load %arg18[%c1_81, %c0_82, %c0_83] : memref<4x8x8xf32, #tpu.memory_space<vmem>>, vector<1x8x8xf32>
    %113 = vector.shape_cast %112 : vector<1x8x8xf32> to vector<8x8xf32>
    %114 = vector.shape_cast %111 : vector<8x8xf32> to vector<1x8x8xf32>
    tpu.vector_store %arg18[%c1_81, %c0_82, %c0_83], %114 {strides = array<i32>} : memref<4x8x8xf32, #tpu.memory_space<vmem>>, vector<1x8x8xf32>,
    %c1_84 = arith.constant 1 : index
    %c0_85 = arith.constant 0 : index
    %c0_86 = arith.constant 0 : index
    %115 = vector.load %arg16[%c1_84, %c0_85, %c0_86] : memref<4x8x1xf32, #tpu.memory_space<vmem>>, vector<1x8x1xf32>
    %116 = vector.shape_cast %115 : vector<1x8x1xf32> to vector<8x1xf32>
    %117 = vector.shape_cast %89 : vector<8x1xf32> to vector<1x8x1xf32>
    tpu.vector_store %arg16[%c1_84, %c0_85, %c0_86], %117 {strides = array<i32>} : memref<4x8x1xf32, #tpu.memory_space<vmem>>, vector<1x8x1xf32>,
    %c2 = arith.constant 2 : index
    %c0_87 = arith.constant 0 : index
    %c0_88 = arith.constant 0 : index
    %118 = vector.load %arg8[%c2, %c0_87, %c0_88] : memref<4x32x8xbf16, #tpu.memory_space<vmem>>, vector<1x32x8xbf16>
    %119 = vector.shape_cast %118 : vector<1x32x8xbf16> to vector<32x8xbf16>
    %cst_89 = arith.constant dense<0.000000e+00> : vector<8x8xf32>
    %120 = tpu.matmul %5, %119, %cst_89 {dimension_numbers = #tpu.dot_dimension_numbers<[1], [0], [0], [1], [0, 0, 1, 1], [], []>} : vector<8x32xbf16>, vector<32x8xbf16>, vector<8x8xf32> -> vector<8x8xf32>
    %c2_90 = arith.constant 2 : index
    %c0_91 = arith.constant 0 : index
    %c0_92 = arith.constant 0 : index
    %121 = vector.load %arg9[%c2_90, %c0_91, %c0_92] : memref<4x1x8xf32, #tpu.memory_space<vmem>>, vector<1x1x8xf32>
    %122 = vector.shape_cast %121 : vector<1x1x8xf32> to vector<1x8xf32>
    %123 = vector.broadcast %122 : vector<1x8xf32> to vector<8x8xf32>
    %124 = arith.addf %120, %123 : vector<8x8xf32>
    %c2_93 = arith.constant 2 : index
    %c0_94 = arith.constant 0 : index
    %c0_95 = arith.constant 0 : index
    %125 = vector.load %arg10[%c2_93, %c0_94, %c0_95] : memref<4x32x8xbf16, #tpu.memory_space<vmem>>, vector<1x32x8xbf16>
    %126 = vector.shape_cast %125 : vector<1x32x8xbf16> to vector<32x8xbf16>
    %cst_96 = arith.constant dense<0.000000e+00> : vector<8x8xf32>
    %127 = tpu.matmul %5, %126, %cst_96 {dimension_numbers = #tpu.dot_dimension_numbers<[1], [0], [0], [1], [0, 0, 1, 1], [], []>} : vector<8x32xbf16>, vector<32x8xbf16>, vector<8x8xf32> -> vector<8x8xf32>
    %c2_97 = arith.constant 2 : index
    %c0_98 = arith.constant 0 : index
    %c0_99 = arith.constant 0 : index
    %128 = vector.load %arg11[%c2_97, %c0_98, %c0_99] : memref<4x1x8xf32, #tpu.memory_space<vmem>>, vector<1x1x8xf32>
    %129 = vector.shape_cast %128 : vector<1x1x8xf32> to vector<1x8xf32>
    %130 = vector.broadcast %129 : vector<1x8xf32> to vector<8x8xf32>
    %131 = arith.addf %127, %130 : vector<8x8xf32>
    %c2_100 = arith.constant 2 : index
    %c0_101 = arith.constant 0 : index
    %c0_102 = arith.constant 0 : index
    %132 = vector.load %arg15[%c2_100, %c0_101, %c0_102] : memref<4x8x8xbf16, #tpu.memory_space<vmem>>, vector<1x8x8xbf16>
    %133 = vector.shape_cast %132 : vector<1x8x8xbf16> to vector<8x8xbf16>
    %134 = arith.truncf %124 : vector<8x8xf32> to vector<8x8xbf16>
    %cst_103 = arith.constant dense<0.000000e+00> : vector<8x8xf32>
    %135 = tpu.matmul %133, %134, %cst_103 {dimension_numbers = #tpu.dot_dimension_numbers<[1], [1], [0], [0], [0, 0, 1, 0], [], []>} : vector<8x8xbf16>, vector<8x8xbf16>, vector<8x8xf32> -> vector<8x8xf32>
    %c0_i32_104 = arith.constant 0 : i32
    %136 = vector.broadcast %c0_i32_104 : i32 to vector<8x8xi32>
    %137 = arith.cmpi eq, %7, %136 : vector<8x8xi32>
    %cst_105 = arith.constant -1.000000e+09 : f32
    %138 = vector.broadcast %cst_105 : f32 to vector<8x8xf32>
    %139 = arith.select %137, %138, %135 : vector<8x8xi1>, vector<8x8xf32>
    %c2_106 = arith.constant 2 : index
    %c0_107 = arith.constant 0 : index
    %c0_108 = arith.constant 0 : index
    %140 = vector.load %arg16[%c2_106, %c0_107, %c0_108] : memref<4x8x1xf32, #tpu.memory_space<vmem>>, vector<1x8x1xf32>
    %141 = vector.shape_cast %140 : vector<1x8x1xf32> to vector<8x1xf32>
    %cst_109 = arith.constant dense<0xFF800000> : vector<8xf32>
    %142 = vector.multi_reduction <maximumf>, %139, %cst_109 [1] : vector<8x8xf32> to vector<8xf32>
    %143 = vector.shape_cast %142 : vector<8xf32> to vector<8x1xf32>
    %144 = arith.maximumf %141, %143 : vector<8x1xf32>
    %145 = arith.subf %141, %144 : vector<8x1xf32>
    %146 = math.exp %145 : vector<8x1xf32>
    %147 = vector.broadcast %144 : vector<8x1xf32> to vector<8x8xf32>
    %148 = arith.subf %139, %147 : vector<8x8xf32>
    %149 = math.exp %148 : vector<8x8xf32>
    %c2_110 = arith.constant 2 : index
    %c0_111 = arith.constant 0 : index
    %c0_112 = arith.constant 0 : index
    %150 = vector.load %arg17[%c2_110, %c0_111, %c0_112] : memref<4x8x1xf32, #tpu.memory_space<vmem>>, vector<1x8x1xf32>
    %151 = vector.shape_cast %150 : vector<1x8x1xf32> to vector<8x1xf32>
    %152 = arith.mulf %146, %151 : vector<8x1xf32>
    %cst_113 = arith.constant dense<0.000000e+00> : vector<8xf32>
    %153 = vector.multi_reduction <add>, %149, %cst_113 [1] : vector<8x8xf32> to vector<8xf32>
    %154 = vector.shape_cast %153 : vector<8xf32> to vector<8x1xf32>
    %155 = arith.addf %152, %154 : vector<8x1xf32>
    %c2_114 = arith.constant 2 : index
    %c0_115 = arith.constant 0 : index
    %c0_116 = arith.constant 0 : index
    %156 = vector.load %arg17[%c2_114, %c0_115, %c0_116] : memref<4x8x1xf32, #tpu.memory_space<vmem>>, vector<1x8x1xf32>
    %157 = vector.shape_cast %156 : vector<1x8x1xf32> to vector<8x1xf32>
    %158 = vector.shape_cast %155 : vector<8x1xf32> to vector<1x8x1xf32>
    tpu.vector_store %arg17[%c2_114, %c0_115, %c0_116], %158 {strides = array<i32>} : memref<4x8x1xf32, #tpu.memory_space<vmem>>, vector<1x8x1xf32>,
    %c2_117 = arith.constant 2 : index
    %c0_118 = arith.constant 0 : index
    %c0_119 = arith.constant 0 : index
    %159 = vector.load %arg18[%c2_117, %c0_118, %c0_119] : memref<4x8x8xf32, #tpu.memory_space<vmem>>, vector<1x8x8xf32>
    %160 = vector.shape_cast %159 : vector<1x8x8xf32> to vector<8x8xf32>
    %161 = vector.broadcast %146 : vector<8x1xf32> to vector<8x8xf32>
    %162 = arith.mulf %161, %160 : vector<8x8xf32>
    %163 = arith.truncf %149 : vector<8x8xf32> to vector<8x8xbf16>
    %164 = arith.truncf %131 : vector<8x8xf32> to vector<8x8xbf16>
    %cst_120 = arith.constant dense<0.000000e+00> : vector<8x8xf32>
    %165 = tpu.matmul %163, %164, %cst_120 {dimension_numbers = #tpu.dot_dimension_numbers<[1], [0], [0], [1], [0, 0, 1, 1], [], []>} : vector<8x8xbf16>, vector<8x8xbf16>, vector<8x8xf32> -> vector<8x8xf32>
    %166 = arith.addf %162, %165 : vector<8x8xf32>
    %c2_121 = arith.constant 2 : index
    %c0_122 = arith.constant 0 : index
    %c0_123 = arith.constant 0 : index
    %167 = vector.load %arg18[%c2_121, %c0_122, %c0_123] : memref<4x8x8xf32, #tpu.memory_space<vmem>>, vector<1x8x8xf32>
    %168 = vector.shape_cast %167 : vector<1x8x8xf32> to vector<8x8xf32>
    %169 = vector.shape_cast %166 : vector<8x8xf32> to vector<1x8x8xf32>
    tpu.vector_store %arg18[%c2_121, %c0_122, %c0_123], %169 {strides = array<i32>} : memref<4x8x8xf32, #tpu.memory_space<vmem>>, vector<1x8x8xf32>,
    %c2_124 = arith.constant 2 : index
    %c0_125 = arith.constant 0 : index
    %c0_126 = arith.constant 0 : index
    %170 = vector.load %arg16[%c2_124, %c0_125, %c0_126] : memref<4x8x1xf32, #tpu.memory_space<vmem>>, vector<1x8x1xf32>
    %171 = vector.shape_cast %170 : vector<1x8x1xf32> to vector<8x1xf32>
    %172 = vector.shape_cast %144 : vector<8x1xf32> to vector<1x8x1xf32>
    tpu.vector_store %arg16[%c2_124, %c0_125, %c0_126], %172 {strides = array<i32>} : memref<4x8x1xf32, #tpu.memory_space<vmem>>, vector<1x8x1xf32>,
    %c3 = arith.constant 3 : index
    %c0_127 = arith.constant 0 : index
    %c0_128 = arith.constant 0 : index
    %173 = vector.load %arg8[%c3, %c0_127, %c0_128] : memref<4x32x8xbf16, #tpu.memory_space<vmem>>, vector<1x32x8xbf16>
    %174 = vector.shape_cast %173 : vector<1x32x8xbf16> to vector<32x8xbf16>
    %cst_129 = arith.constant dense<0.000000e+00> : vector<8x8xf32>
    %175 = tpu.matmul %5, %174, %cst_129 {dimension_numbers = #tpu.dot_dimension_numbers<[1], [0], [0], [1], [0, 0, 1, 1], [], []>} : vector<8x32xbf16>, vector<32x8xbf16>, vector<8x8xf32> -> vector<8x8xf32>
    %c3_130 = arith.constant 3 : index
    %c0_131 = arith.constant 0 : index
    %c0_132 = arith.constant 0 : index
    %176 = vector.load %arg9[%c3_130, %c0_131, %c0_132] : memref<4x1x8xf32, #tpu.memory_space<vmem>>, vector<1x1x8xf32>
    %177 = vector.shape_cast %176 : vector<1x1x8xf32> to vector<1x8xf32>
    %178 = vector.broadcast %177 : vector<1x8xf32> to vector<8x8xf32>
    %179 = arith.addf %175, %178 : vector<8x8xf32>
    %c3_133 = arith.constant 3 : index
    %c0_134 = arith.constant 0 : index
    %c0_135 = arith.constant 0 : index
    %180 = vector.load %arg10[%c3_133, %c0_134, %c0_135] : memref<4x32x8xbf16, #tpu.memory_space<vmem>>, vector<1x32x8xbf16>
    %181 = vector.shape_cast %180 : vector<1x32x8xbf16> to vector<32x8xbf16>
    %cst_136 = arith.constant dense<0.000000e+00> : vector<8x8xf32>
    %182 = tpu.matmul %5, %181, %cst_136 {dimension_numbers = #tpu.dot_dimension_numbers<[1], [0], [0], [1], [0, 0, 1, 1], [], []>} : vector<8x32xbf16>, vector<32x8xbf16>, vector<8x8xf32> -> vector<8x8xf32>
    %c3_137 = arith.constant 3 : index
    %c0_138 = arith.constant 0 : index
    %c0_139 = arith.constant 0 : index
    %183 = vector.load %arg11[%c3_137, %c0_138, %c0_139] : memref<4x1x8xf32, #tpu.memory_space<vmem>>, vector<1x1x8xf32>
    %184 = vector.shape_cast %183 : vector<1x1x8xf32> to vector<1x8xf32>
    %185 = vector.broadcast %184 : vector<1x8xf32> to vector<8x8xf32>
    %186 = arith.addf %182, %185 : vector<8x8xf32>
    %c3_140 = arith.constant 3 : index
    %c0_141 = arith.constant 0 : index
    %c0_142 = arith.constant 0 : index
    %187 = vector.load %arg15[%c3_140, %c0_141, %c0_142] : memref<4x8x8xbf16, #tpu.memory_space<vmem>>, vector<1x8x8xbf16>
    %188 = vector.shape_cast %187 : vector<1x8x8xbf16> to vector<8x8xbf16>
    %189 = arith.truncf %179 : vector<8x8xf32> to vector<8x8xbf16>
    %cst_143 = arith.constant dense<0.000000e+00> : vector<8x8xf32>
    %190 = tpu.matmul %188, %189, %cst_143 {dimension_numbers = #tpu.dot_dimension_numbers<[1], [1], [0], [0], [0, 0, 1, 0], [], []>} : vector<8x8xbf16>, vector<8x8xbf16>, vector<8x8xf32> -> vector<8x8xf32>
    %c0_i32_144 = arith.constant 0 : i32
    %191 = vector.broadcast %c0_i32_144 : i32 to vector<8x8xi32>
    %192 = arith.cmpi eq, %7, %191 : vector<8x8xi32>
    %cst_145 = arith.constant -1.000000e+09 : f32
    %193 = vector.broadcast %cst_145 : f32 to vector<8x8xf32>
    %194 = arith.select %192, %193, %190 : vector<8x8xi1>, vector<8x8xf32>
    %c3_146 = arith.constant 3 : index
    %c0_147 = arith.constant 0 : index
    %c0_148 = arith.constant 0 : index
    %195 = vector.load %arg16[%c3_146, %c0_147, %c0_148] : memref<4x8x1xf32, #tpu.memory_space<vmem>>, vector<1x8x1xf32>
    %196 = vector.shape_cast %195 : vector<1x8x1xf32> to vector<8x1xf32>
    %cst_149 = arith.constant dense<0xFF800000> : vector<8xf32>
    %197 = vector.multi_reduction <maximumf>, %194, %cst_149 [1] : vector<8x8xf32> to vector<8xf32>
    %198 = vector.shape_cast %197 : vector<8xf32> to vector<8x1xf32>
    %199 = arith.maximumf %196, %198 : vector<8x1xf32>
    %200 = arith.subf %196, %199 : vector<8x1xf32>
    %201 = math.exp %200 : vector<8x1xf32>
    %202 = vector.broadcast %199 : vector<8x1xf32> to vector<8x8xf32>
    %203 = arith.subf %194, %202 : vector<8x8xf32>
    %204 = math.exp %203 : vector<8x8xf32>
    %c3_150 = arith.constant 3 : index
    %c0_151 = arith.constant 0 : index
    %c0_152 = arith.constant 0 : index
    %205 = vector.load %arg17[%c3_150, %c0_151, %c0_152] : memref<4x8x1xf32, #tpu.memory_space<vmem>>, vector<1x8x1xf32>
    %206 = vector.shape_cast %205 : vector<1x8x1xf32> to vector<8x1xf32>
    %207 = arith.mulf %201, %206 : vector<8x1xf32>
    %cst_153 = arith.constant dense<0.000000e+00> : vector<8xf32>
    %208 = vector.multi_reduction <add>, %204, %cst_153 [1] : vector<8x8xf32> to vector<8xf32>
    %209 = vector.shape_cast %208 : vector<8xf32> to vector<8x1xf32>
    %210 = arith.addf %207, %209 : vector<8x1xf32>
    %c3_154 = arith.constant 3 : index
    %c0_155 = arith.constant 0 : index
    %c0_156 = arith.constant 0 : index
    %211 = vector.load %arg17[%c3_154, %c0_155, %c0_156] : memref<4x8x1xf32, #tpu.memory_space<vmem>>, vector<1x8x1xf32>
    %212 = vector.shape_cast %211 : vector<1x8x1xf32> to vector<8x1xf32>
    %213 = vector.shape_cast %210 : vector<8x1xf32> to vector<1x8x1xf32>
    tpu.vector_store %arg17[%c3_154, %c0_155, %c0_156], %213 {strides = array<i32>} : memref<4x8x1xf32, #tpu.memory_space<vmem>>, vector<1x8x1xf32>,
    %c3_157 = arith.constant 3 : index
    %c0_158 = arith.constant 0 : index
    %c0_159 = arith.constant 0 : index
    %214 = vector.load %arg18[%c3_157, %c0_158, %c0_159] : memref<4x8x8xf32, #tpu.memory_space<vmem>>, vector<1x8x8xf32>
    %215 = vector.shape_cast %214 : vector<1x8x8xf32> to vector<8x8xf32>
    %216 = vector.broadcast %201 : vector<8x1xf32> to vector<8x8xf32>
    %217 = arith.mulf %216, %215 : vector<8x8xf32>
    %218 = arith.truncf %204 : vector<8x8xf32> to vector<8x8xbf16>
    %219 = arith.truncf %186 : vector<8x8xf32> to vector<8x8xbf16>
    %cst_160 = arith.constant dense<0.000000e+00> : vector<8x8xf32>
    %220 = tpu.matmul %218, %219, %cst_160 {dimension_numbers = #tpu.dot_dimension_numbers<[1], [0], [0], [1], [0, 0, 1, 1], [], []>} : vector<8x8xbf16>, vector<8x8xbf16>, vector<8x8xf32> -> vector<8x8xf32>
    %221 = arith.addf %217, %220 : vector<8x8xf32>
    %c3_161 = arith.constant 3 : index
    %c0_162 = arith.constant 0 : index
    %c0_163 = arith.constant 0 : index
    %222 = vector.load %arg18[%c3_161, %c0_162, %c0_163] : memref<4x8x8xf32, #tpu.memory_space<vmem>>, vector<1x8x8xf32>
    %223 = vector.shape_cast %222 : vector<1x8x8xf32> to vector<8x8xf32>
    %224 = vector.shape_cast %221 : vector<8x8xf32> to vector<1x8x8xf32>
    tpu.vector_store %arg18[%c3_161, %c0_162, %c0_163], %224 {strides = array<i32>} : memref<4x8x8xf32, #tpu.memory_space<vmem>>, vector<1x8x8xf32>,
    %c3_164 = arith.constant 3 : index
    %c0_165 = arith.constant 0 : index
    %c0_166 = arith.constant 0 : index
    %225 = vector.load %arg16[%c3_164, %c0_165, %c0_166] : memref<4x8x1xf32, #tpu.memory_space<vmem>>, vector<1x8x1xf32>
    %226 = vector.shape_cast %225 : vector<1x8x1xf32> to vector<8x1xf32>
    %227 = vector.shape_cast %199 : vector<8x1xf32> to vector<1x8x1xf32>
    tpu.vector_store %arg16[%c3_164, %c0_165, %c0_166], %227 {strides = array<i32>} : memref<4x8x1xf32, #tpu.memory_space<vmem>>, vector<1x8x1xf32>,
    %c0_i32_167 = arith.constant 0 : i32
    %228 = arith.cmpi eq, %arg2, %c0_i32_167 : i32
    %229 = arith.extui %228 : i1 to i32
    %c0_i32_168 = arith.constant 0 : i32
    %230 = arith.cmpi ne, %229, %c0_i32_168 : i32
    scf.if %230 {
      %c0_169 = arith.constant 0 : index
      %c0_170 = arith.constant 0 : index
      %c0_171 = arith.constant 0 : index
      %231 = vector.load %arg18[%c0_169, %c0_170, %c0_171] : memref<4x8x8xf32, #tpu.memory_space<vmem>>, vector<1x8x8xf32>
      %232 = vector.shape_cast %231 : vector<1x8x8xf32> to vector<8x8xf32>
      %c0_172 = arith.constant 0 : index
      %c0_173 = arith.constant 0 : index
      %c0_174 = arith.constant 0 : index
      %233 = vector.load %arg17[%c0_172, %c0_173, %c0_174] : memref<4x8x1xf32, #tpu.memory_space<vmem>>, vector<1x8x1xf32>
      %234 = vector.shape_cast %233 : vector<1x8x1xf32> to vector<8x1xf32>
      %235 = tpu.reciprocal %234 {approx = true} : vector<8x1xf32> -> vector<8x1xf32>
      %236 = vector.broadcast %235 : vector<8x1xf32> to vector<8x8xf32>
      %237 = arith.mulf %232, %236 : vector<8x8xf32>
      %238 = arith.truncf %237 : vector<8x8xf32> to vector<8x8xbf16>
      %c0_175 = arith.constant 0 : index
      %c0_176 = arith.constant 0 : index
      %c0_177 = arith.constant 0 : index
      %239 = vector.load %arg12[%c0_175, %c0_176, %c0_177] : memref<4x8x32xbf16, #tpu.memory_space<vmem>>, vector<1x8x32xbf16>
      %240 = vector.shape_cast %239 : vector<1x8x32xbf16> to vector<8x32xbf16>
      %cst_178 = arith.constant dense<0.000000e+00> : vector<8x32xf32>
      %241 = tpu.matmul %238, %240, %cst_178 {dimension_numbers = #tpu.dot_dimension_numbers<[1], [0], [0], [1], [0, 0, 1, 1], [], []>} : vector<8x8xbf16>, vector<8x32xbf16>, vector<8x32xf32> -> vector<8x32xf32>
      %c1_179 = arith.constant 1 : index
      %c0_180 = arith.constant 0 : index
      %c0_181 = arith.constant 0 : index
      %242 = vector.load %arg18[%c1_179, %c0_180, %c0_181] : memref<4x8x8xf32, #tpu.memory_space<vmem>>, vector<1x8x8xf32>
      %243 = vector.shape_cast %242 : vector<1x8x8xf32> to vector<8x8xf32>
      %c1_182 = arith.constant 1 : index
      %c0_183 = arith.constant 0 : index
      %c0_184 = arith.constant 0 : index
      %244 = vector.load %arg17[%c1_182, %c0_183, %c0_184] : memref<4x8x1xf32, #tpu.memory_space<vmem>>, vector<1x8x1xf32>
      %245 = vector.shape_cast %244 : vector<1x8x1xf32> to vector<8x1xf32>
      %246 = tpu.reciprocal %245 {approx = true} : vector<8x1xf32> -> vector<8x1xf32>
      %247 = vector.broadcast %246 : vector<8x1xf32> to vector<8x8xf32>
      %248 = arith.mulf %243, %247 : vector<8x8xf32>
      %249 = arith.truncf %248 : vector<8x8xf32> to vector<8x8xbf16>
      %c1_185 = arith.constant 1 : index
      %c0_186 = arith.constant 0 : index
      %c0_187 = arith.constant 0 : index
      %250 = vector.load %arg12[%c1_185, %c0_186, %c0_187] : memref<4x8x32xbf16, #tpu.memory_space<vmem>>, vector<1x8x32xbf16>
      %251 = vector.shape_cast %250 : vector<1x8x32xbf16> to vector<8x32xbf16>
      %cst_188 = arith.constant dense<0.000000e+00> : vector<8x32xf32>
      %252 = tpu.matmul %249, %251, %cst_188 {dimension_numbers = #tpu.dot_dimension_numbers<[1], [0], [0], [1], [0, 0, 1, 1], [], []>} : vector<8x8xbf16>, vector<8x32xbf16>, vector<8x32xf32> -> vector<8x32xf32>
      %253 = arith.addf %241, %252 : vector<8x32xf32>
      %c2_189 = arith.constant 2 : index
      %c0_190 = arith.constant 0 : index
      %c0_191 = arith.constant 0 : index
      %254 = vector.load %arg18[%c2_189, %c0_190, %c0_191] : memref<4x8x8xf32, #tpu.memory_space<vmem>>, vector<1x8x8xf32>
      %255 = vector.shape_cast %254 : vector<1x8x8xf32> to vector<8x8xf32>
      %c2_192 = arith.constant 2 : index
      %c0_193 = arith.constant 0 : index
      %c0_194 = arith.constant 0 : index
      %256 = vector.load %arg17[%c2_192, %c0_193, %c0_194] : memref<4x8x1xf32, #tpu.memory_space<vmem>>, vector<1x8x1xf32>
      %257 = vector.shape_cast %256 : vector<1x8x1xf32> to vector<8x1xf32>
      %258 = tpu.reciprocal %257 {approx = true} : vector<8x1xf32> -> vector<8x1xf32>
      %259 = vector.broadcast %258 : vector<8x1xf32> to vector<8x8xf32>
      %260 = arith.mulf %255, %259 : vector<8x8xf32>
      %261 = arith.truncf %260 : vector<8x8xf32> to vector<8x8xbf16>
      %c2_195 = arith.constant 2 : index
      %c0_196 = arith.constant 0 : index
      %c0_197 = arith.constant 0 : index
      %262 = vector.load %arg12[%c2_195, %c0_196, %c0_197] : memref<4x8x32xbf16, #tpu.memory_space<vmem>>, vector<1x8x32xbf16>
      %263 = vector.shape_cast %262 : vector<1x8x32xbf16> to vector<8x32xbf16>
      %cst_198 = arith.constant dense<0.000000e+00> : vector<8x32xf32>
      %264 = tpu.matmul %261, %263, %cst_198 {dimension_numbers = #tpu.dot_dimension_numbers<[1], [0], [0], [1], [0, 0, 1, 1], [], []>} : vector<8x8xbf16>, vector<8x32xbf16>, vector<8x32xf32> -> vector<8x32xf32>
      %265 = arith.addf %253, %264 : vector<8x32xf32>
      %c3_199 = arith.constant 3 : index
      %c0_200 = arith.constant 0 : index
      %c0_201 = arith.constant 0 : index
      %266 = vector.load %arg18[%c3_199, %c0_200, %c0_201] : memref<4x8x8xf32, #tpu.memory_space<vmem>>, vector<1x8x8xf32>
      %267 = vector.shape_cast %266 : vector<1x8x8xf32> to vector<8x8xf32>
      %c3_202 = arith.constant 3 : index
      %c0_203 = arith.constant 0 : index
      %c0_204 = arith.constant 0 : index
      %268 = vector.load %arg17[%c3_202, %c0_203, %c0_204] : memref<4x8x1xf32, #tpu.memory_space<vmem>>, vector<1x8x1xf32>
      %269 = vector.shape_cast %268 : vector<1x8x1xf32> to vector<8x1xf32>
      %270 = tpu.reciprocal %269 {approx = true} : vector<8x1xf32> -> vector<8x1xf32>
      %271 = vector.broadcast %270 : vector<8x1xf32> to vector<8x8xf32>
      %272 = arith.mulf %267, %271 : vector<8x8xf32>
      %273 = arith.truncf %272 : vector<8x8xf32> to vector<8x8xbf16>
      %c3_205 = arith.constant 3 : index
      %c0_206 = arith.constant 0 : index
      %c0_207 = arith.constant 0 : index
      %274 = vector.load %arg12[%c3_205, %c0_206, %c0_207] : memref<4x8x32xbf16, #tpu.memory_space<vmem>>, vector<1x8x32xbf16>
      %275 = vector.shape_cast %274 : vector<1x8x32xbf16> to vector<8x32xbf16>
      %cst_208 = arith.constant dense<0.000000e+00> : vector<8x32xf32>
      %276 = tpu.matmul %273, %275, %cst_208 {dimension_numbers = #tpu.dot_dimension_numbers<[1], [0], [0], [1], [0, 0, 1, 1], [], []>} : vector<8x8xbf16>, vector<8x32xbf16>, vector<8x32xf32> -> vector<8x32xf32>
      %277 = arith.addf %265, %276 : vector<8x32xf32>
      %c0_209 = arith.constant 0 : index
      %c0_210 = arith.constant 0 : index
      %278 = vector.load %arg13[%c0_209, %c0_210] : memref<1x32xf32, #tpu.memory_space<vmem>>, vector<1x32xf32>
      %279 = vector.broadcast %278 : vector<1x32xf32> to vector<8x32xf32>
      %280 = arith.addf %277, %279 : vector<8x32xf32>
      %c0_211 = arith.constant 0 : index
      %c0_212 = arith.constant 0 : index
      %c0_213 = arith.constant 0 : index
      %281 = vector.load %arg14[%c0_211, %c0_212, %c0_213] : memref<1x8x32xf32, #tpu.memory_space<vmem>>, vector<1x8x32xf32>
      %282 = vector.shape_cast %281 : vector<1x8x32xf32> to vector<8x32xf32>
      %283 = vector.shape_cast %280 : vector<8x32xf32> to vector<1x8x32xf32>
      tpu.vector_store %arg14[%c0_211, %c0_212, %c0_213], %283 {strides = array<i32>} : memref<1x8x32xf32, #tpu.memory_space<vmem>>, vector<1x8x32xf32>,
    } else {
    }
    return
  }
  func.func @transform_0(%arg0: i32, %arg1: i32, %arg2: i32) -> (i32, i32, i32) {
    %c0_i32 = arith.constant 0 : i32
    %c0_i32_0 = arith.constant 0 : i32
    return %arg0, %arg1, %c0_i32 : i32, i32, i32
  }
  func.func @transform_1(%arg0: i32, %arg1: i32, %arg2: i32) -> (i32, i32, i32) {
    %c0_i32 = arith.constant 0 : i32
    %c0_i32_0 = arith.constant 0 : i32
    return %arg0, %arg2, %c0_i32 : i32, i32, i32
  }
  func.func @transform_2(%arg0: i32, %arg1: i32, %arg2: i32) -> (i32, i32, i32, i32) {
    %c0_i32 = arith.constant 0 : i32
    %c0_i32_0 = arith.constant 0 : i32
    return %arg0, %c0_i32, %arg1, %arg2 : i32, i32, i32, i32
  }
  func.func @transform_3(%arg0: i32, %arg1: i32, %arg2: i32) -> (i32, i32, i32) {
    %c0_i32 = arith.constant 0 : i32
    %c0_i32_0 = arith.constant 0 : i32
    %c0_i32_1 = arith.constant 0 : i32
    %c0_i32_2 = arith.constant 0 : i32
    return %c0_i32, %c0_i32_0, %c0_i32_1 : i32, i32, i32
  }
  func.func @transform_4(%arg0: i32, %arg1: i32, %arg2: i32) -> (i32, i32, i32) {
    %c0_i32 = arith.constant 0 : i32
    %c0_i32_0 = arith.constant 0 : i32
    %c0_i32_1 = arith.constant 0 : i32
    %c0_i32_2 = arith.constant 0 : i32
    return %c0_i32, %c0_i32_0, %c0_i32_1 : i32, i32, i32
  }
  func.func @transform_5(%arg0: i32, %arg1: i32, %arg2: i32) -> (i32, i32, i32) {
    %c0_i32 = arith.constant 0 : i32
    %c0_i32_0 = arith.constant 0 : i32
    %c0_i32_1 = arith.constant 0 : i32
    %c0_i32_2 = arith.constant 0 : i32
    return %c0_i32, %c0_i32_0, %c0_i32_1 : i32, i32, i32
  }
  func.func @transform_6(%arg0: i32, %arg1: i32, %arg2: i32) -> (i32, i32, i32) {
    %c0_i32 = arith.constant 0 : i32
    %c0_i32_0 = arith.constant 0 : i32
    %c0_i32_1 = arith.constant 0 : i32
    %c0_i32_2 = arith.constant 0 : i32
    return %c0_i32, %c0_i32_0, %c0_i32_1 : i32, i32, i32
  }
  func.func @transform_7(%arg0: i32, %arg1: i32, %arg2: i32) -> (i32, i32, i32) {
    %c0_i32 = arith.constant 0 : i32
    %c0_i32_0 = arith.constant 0 : i32
    %c0_i32_1 = arith.constant 0 : i32
    %c0_i32_2 = arith.constant 0 : i32
    return %c0_i32, %c0_i32_0, %c0_i32_1 : i32, i32, i32
  }
  func.func @transform_8(%arg0: i32, %arg1: i32, %arg2: i32) -> (i32, i32, i32) {
    %c0_i32 = arith.constant 0 : i32
    %c0_i32_0 = arith.constant 0 : i32
    %c0_i32_1 = arith.constant 0 : i32
    %c0_i32_2 = arith.constant 0 : i32
    return %c0_i32, %c0_i32_0, %c0_i32_1 : i32, i32, i32
  }
  func.func @transform_9(%arg0: i32, %arg1: i32, %arg2: i32) -> (i32, i32, i32) {
    %c0_i32 = arith.constant 0 : i32
    %c0_i32_0 = arith.constant 0 : i32
    %c0_i32_1 = arith.constant 0 : i32
    %c0_i32_2 = arith.constant 0 : i32
    return %c0_i32, %c0_i32_0, %c0_i32_1 : i32, i32, i32
  }
  func.func @transform_10(%arg0: i32, %arg1: i32, %arg2: i32) -> (i32, i32) {
    %c0_i32 = arith.constant 0 : i32
    %c0_i32_0 = arith.constant 0 : i32
    %c0_i32_1 = arith.constant 0 : i32
    return %c0_i32, %c0_i32_0 : i32, i32
  }
  func.func @transform_11(%arg0: i32, %arg1: i32, %arg2: i32) -> (i32, i32, i32) {
    %c0_i32 = arith.constant 0 : i32
    %c0_i32_0 = arith.constant 0 : i32
    return %arg0, %arg1, %c0_i32 : i32, i32, i32
  }
}

</mosaic_0001>

<bundles_post_ra>
// kernel: tpu_custom_call.1
= control target key start
LH: loop header
LB: loop body
LE: loop exit
PB: predicated region body
PF: predicated region fallthrough
CT: control target
= control target key end

     0   :  { %s3307_s0 = inlined_call_operand.vmem [shape: f32[2,8,32], index: 0, kind: input, shape index: {}]   ;;  %s3308_s1 = inlined_call_operand.vmem [shape: f32[2,8,32], index: 1, kind: input, shape index: {}]   ;;  %s3309_s2 = inlined_call_operand.vmem [shape: s32[2,1,8,8], index: 2, kind: input, shape index: {}]   ;;  %s3310_s3 = inlined_call_operand.vmem [shape: bf16[4,32,8], index: 3, kind: input, shape index: {}]   ;;  %s3311_s4 = inlined_call_operand.vmem [shape: f32[4,1,8], index: 4, kind: input, shape index: {}]   ;;  %s3312_s5 = inlined_call_operand.vmem [shape: bf16[4,32,8], index: 5, kind: input, shape index: {}]   ;;  %s3313_s6 = inlined_call_operand.vmem [shape: f32[4,1,8], index: 6, kind: input, shape index: {}]   ;;  %s3314_s7 = inlined_call_operand.vmem [shape: bf16[4,32,8], index: 7, kind: input, shape index: {}]   ;;  %s3315_s8 = inlined_call_operand.vmem [shape: f32[4,1,8], index: 8, kind: input, shape index: {}]   ;;  %s3316_s9 = inlined_call_operand.vmem [shape: bf16[4,8,32], index: 9, kind: input, shape index: {}]   ;;  %s3317_s10 = inlined_call_operand.vmem [shape: f32[1,32], index: 10, kind: input, shape index: {}]   ;;  %s3318_s11 = inlined_call_operand.hbm [shape: f32[2,8,32], index: 11, kind: output, shape index: {}]  }
   0x1   :  { %3319 = sst [smem:[#allocation9_spill]] %s3307_s0 }
   0x2   :  { %3320 = sst [smem:[#allocation10_spill]] %s3308_s1 }
   0x3   :  { %16 = vsyncpa [#allocation7], 0 }
   0x4   :  { %18 = vsyncpa [#allocation7 + $0x1], 0  ;;  %s2810_s17 = smov 0   ;;  %s2812_s18 = smov 0  }
   0x5   :  { %s2814_s19 = smov 0   ;;  %s2816_s20 = smov 0  }
   0x6   :  { %s2818_s21 = smov 0   ;;  %s2820_s22 = smov 0  }
   0x7 LB: > { %s2206_s23 = sadd.s32 4294967295, %s2743_s22   ;;  %s2207_s24 = sadd.s32 4294967294, %s2743_s22   ;;  %s2743_s22 = sphi %s2820_s22, %s24_s22   ;;  %s2739_s21 = sphi %s2818_s21, %s3329_s21   ;;  %s2735_s20 = sphi %s2816_s20, %s3328_s20   ;;  %s2731_s19 = sphi %s2814_s19, %s3327_s19   ;;  %s2727_s18 = sphi %s2812_s18, %s3326_s18   ;;  %s2723_s17 = sphi %s2810_s17, %s3325_s17  }
   0x8   : > { %s43_s25 = sadd.s32 1, %s2739_s21  ;;  %s306_s26 = sadd.s32 1, %s2731_s19 }
   0x9   : > { %p45_p0 = scmp.ge.s32.totalorder %s43_s25, 2  ;;  %p316_p1 = scmp.ne.s32.totalorder %s2731_s19, %s2727_s18 }
   0xa   : > { %p317_p2 = scmp.eq.s32.totalorder %s2206_s23, 1  ;;  %p322_p3 = scmp.ne.s32.totalorder %s2727_s18, %s2723_s17 }
   0xb   : > { %s3331_s25 = smov (%p45_p0, %s43_s25), 0  ;;  %p323_p5 = scmp.eq.s32.totalorder %s2207_s24, 1 }
   0xc   : > { %p2850_p4 = por %p317_p2, %p316_p1  ;;  %s301_s28 = ssub.s32 %s2739_s21, %s3331_s25 }
   0xd   : > { %p2210_p6 = scmp.ge.s32.totalorder %s2743_s22, 1  ;;  %p304_p7 = scmp.eq.s32.totalorder %s301_s28, 0 }
   0xe   : > { %p2857_p8 = por %p323_p5, %p322_p3  ;;  %p398_p9 = scmp.lt.s32.totalorder %s2743_s22, 3 }
   0xf   : > { %s2863_s30 = scalar_select %p304_p7, %s2731_s19, %s306_s26  }
  0x10   : > { %p399_p10 = pnand %p2210_p6, %p398_p9 }
  0x11   : > { %v2617_v0 = vld [vmem:[%s3310_s3] sm:$0xff] (!%p399_p10)   ;;  %v2745_v1 = vmov (!%p399_p10), 0.0   ;;  %v2618_v2 = vld [vmem:[%s3310_s3 + $0x8] sm:$0xff] (!%p399_p10)   ;;  %vm2746_vm0 = vmmov (!%p399_p10), 0   ;;  %p457_p11 = scmp.lt.s32.totalorder (!%p399_p10), %s2735_s20, 1  ;;  %s3323_s0 = sld [smem:[#allocation9_spill]] (!%p399_p10) }
  0x12   : > { %402 = sbr.rel (%p399_p10) target bundleno = 1995 (0x7cb), region = 64  ;;  %2388 = vmatprep.subr.bf16.mxu0 (!%p399_p10), %v2745_v1  ;;  %2396 = vmatprep.subr.bf16.mxu1 (!%p399_p10), %v2745_v1  ;;  %vm511_vm1 = vcmask (!%p399_p10), 261120   ;;  %v2619_v4 = vld [vmem:[%s3310_s3 + $0x20] sm:$0xff] (!%p399_p10)   ;;  %v2620_v6 = vld [vmem:[%s3310_s3 + $0x28] sm:$0xff] (!%p399_p10)   ;;  %s3324_s1 = sld [smem:[#allocation10_spill]] (!%p399_p10)  ;;  %vm775_vm2 = vcmask (!%p399_p10), 64512  }
  0x13   : > { %2389 = vmatpush3.bf16.msra.mxu0 (!%p399_p10), %v2617_v0  ;;  %2392 = vmatprep.mubr.msk.bf16.mxu0 (!%p399_p10), %vm2746_vm0, %v2745_v1  ;;  %v2621_v7 = vld [vmem:[%s3312_s5] sm:$0xff] (!%p399_p10)   ;;  %v2622_v9 = vld [vmem:[%s3312_s5 + $0x8] sm:$0xff] (!%p399_p10)   ;;  %776 = vst.msk [vmem:[#allocation5] sm:$0xff] (!%p399_p10), %vm775_vm2, %v2745_v1  ;;  %777 = vst.msk [vmem:[#allocation5 + $0x8] sm:$0xff] (!%p399_p10), %vm775_vm2, %v2745_v1  ;;  %vm557_vm3 = vcmask (!%p399_p10), 60416   ;;  %vm766_vm4 = vcmask (!%p399_p10), 7168  }
  0x14   : > { %2390 = vmatprep.subr.bf16.mxu0 (!%p399_p10), %v2745_v1  ;;  %2400 = vmatprep.mubr.msk.bf16.mxu1 (!%p399_p10), %vm2746_vm0, %v2745_v1  ;;  %778 = vst.msk [vmem:[#allocation5 + $0x10] sm:$0xff] (!%p399_p10), %vm775_vm2, %v2745_v1  ;;  %779 = vst.msk [vmem:[#allocation5 + $0x18] sm:$0xff] (!%p399_p10), %vm775_vm2, %v2745_v1  ;;  %v2623_v11 = vld [vmem:[%s3310_s3 + $0x10] sm:$0xff] (!%p399_p10)   ;;  %v2624_v12 = vld [vmem:[%s3310_s3 + $0x18] sm:$0xff] (!%p399_p10)   ;;  %v2747_v49 = vmov (!%p399_p10), -inf   ;;  %vm1000_vm6 = vcmask (!%p399_p10), 1043456  }
  0x15   : > { %2397 = vmatpush3.bf16.msra.mxu1 (!%p399_p10), %v2623_v11  ;;  %v2215_v13 = vld [vmem:[%s3311_s4] ss:$0 sm:$0xff] (!%p399_p10)  ;;  %v2233_v21 = vld [vmem:[%s3311_s4 + $0x2] ss:$0 sm:$0xff] (!%p399_p10)  ;;  %v2625_v37 = vld [vmem:[%s3312_s5 + $0x10] sm:$0xff] (!%p399_p10)   ;;  %767 = vst.msk [vmem:[#allocation3] sm:$0xff] (!%p399_p10), %vm766_vm4, %v2747_v49 }
  0x16   : > { %2398 = vmatprep.subr.bf16.mxu1 (!%p399_p10), %v2745_v1  ;;  %v2246_v29 = vld [vmem:[%s3313_s6] ss:$0 sm:$0xff] (!%p399_p10)  ;;  %v2626_v39 = vld [vmem:[%s3312_s5 + $0x18] sm:$0xff] (!%p399_p10)   ;;  %v2224_v40 = vld [vmem:[%s3311_s4 + $0x1] ss:$0 sm:$0xff] (!%p399_p10)  ;;  %768 = vst.msk [vmem:[#allocation3 + $0x8] sm:$0xff] (!%p399_p10), %vm766_vm4, %v2747_v49 }
  0x17   : > { %2391 = vmatpush3.bf16.msra.mxu0 (!%p399_p10), %v2618_v2  ;;  %v2629_v48 = vld [vmem:[%s3310_s3 + $0x30] sm:$0xff] (!%p399_p10)   ;;  %769 = vst.msk [vmem:[#allocation3 + $0x10] sm:$0xff] (!%p399_p10), %vm766_vm4, %v2747_v49  ;;  %770 = vst.msk [vmem:[#allocation3 + $0x18] sm:$0xff] (!%p399_p10), %vm766_vm4, %v2747_v49  ;;  %v2630_v50 = vld [vmem:[%s3310_s3 + $0x38] sm:$0xff] (!%p399_p10)  }
  0x18   : > { %2404 = vmatprep.subr.bf16.mxu0 (!%p399_p10), %v2745_v1  ;;  %771 = vst.msk [vmem:[#allocation4] sm:$0xff] (!%p399_p10), %vm766_vm4, %v2745_v1  ;;  %772 = vst.msk [vmem:[#allocation4 + $0x8] sm:$0xff] (!%p399_p10), %vm766_vm4, %v2745_v1  ;;  %v2631_v51 = vld [vmem:[%s3314_s7] sm:$0xff] (!%p399_p10)   ;;  %v2632_v52 = vld [vmem:[%s3314_s7 + $0x8] sm:$0xff] (!%p399_p10)  }
  0x19   : > { %s458_s16 = scalar_select %p457_p11, %s2735_s20, 1  ;;  %2399 = vmatpush3.bf16.msra.mxu1 %v2624_v12  ;;  %773 = vst.msk [vmem:[#allocation4 + $0x10] sm:$0xff] %vm766_vm4, %v2745_v1  ;;  %774 = vst.msk [vmem:[#allocation4 + $0x18] sm:$0xff] %vm766_vm4, %v2745_v1  ;;  %v2261_v60 = vld [vmem:[%s3313_s6 + $0x1] ss:$0 sm:$0xff] }
  0x1a   : > { %2412 = vmatprep.subr.bf16.mxu1 %v2745_v1 }
  0x1b   : > { %s2880_s23 = sshll.u32 %s458_s16, 3 }
  0x1c   : > { %s463_s28 = scalar_lea.vmem %s3323_s0, %s2880_s23  ;;  %s470_s12 = scalar_lea.vmem %s3324_s1, %s2880_s23 }
  0x1d   : > { %v486_v3 = vld [vmem:[%s463_s28] sm:$0xff]  ;;  %s480_s24 = scalar_lea.vmem %s3309_s2, %s2880_s23  ;;  %s2749_s28 = smov [#allocation6]  }
  0x1e   : > { %v2890_v5 = vpack.c.bf16 %v486_v3, %v486_v3  ;;  %v780_v8 = vld [vmem:[%s470_s12] sm:$0xff]  ;;  %s2325_s12 = sshll.u32 %s2735_s20, 7  ;;  %s2669_s23 = sshll.u32 %s2749_s28, 4  ;;  %s2670_s23 = int_to_ptr.vmem [resolvable:$false] %s2669_s23 }
  0x1f   : > { %v2916_v10 = vpack.c.bf16 %v780_v8, %v780_v8  ;;  %v3015_v53 = vld [vmem:[%s480_s24] sm:$0xff]  ;;  %v2628_v8 = vld [vmem:[%s3312_s5 + $0x28] sm:$0xff]   ;;  %s454_s24 = sand.u32 1, %s2727_s18   ;;  %s3259_s0 = scalar_lea.hbm %s3318_s11, %s2325_s12 }
  0x20   : > { %2393 = vmatmul.mubr.msk.bf16.vlgmr.msra.gmra.mrb[0].mxu0 %vm511_vm1, %v2890_v5  ;;  %2401 = vmatmul.mubr.msk.bf16.vlgmr.msra.gmra.mrb[0].mxu1 %vm511_vm1, %v2890_v5  ;;  %vm962_vm5 = vcmp.eq.s32.totalorder %v3015_v53, 0  ;;  %s2211_s26 = sshll.u32 %s454_s24, 3  ;;  %s2085_s20 = scalar_lea.sflag [#allocation7], %s454_s24 }
  0x21   : > { %2405 = vmatpush3.bf16.msra.mxu0 %v2619_v4  ;;  %2408 = vmatprep.mubr.msk.bf16.mxu0 %vm2746_vm0, %v2745_v1  ;;  %s456_s13 = scalar_lea.vmem [#allocation6], %s2211_s26  ;;  %s2671_s1 = scalar_lea.vmem %s2670_s23, 256 }
  0x22   : > { %2406 = vmatprep.subr.bf16.mxu0 %v2745_v1  ;;  %2416 = vmatprep.mubr.msk.bf16.mxu1 %vm2746_vm0, %v2745_v1  ;;  %s2099_s14 = sshll.u32 %s456_s13, 4  ;;  %s3261_s14 = int_to_ptr.vmem [resolvable:$true] %s2099_s14 }
  0x23   : > { %2413 = vmatpush3.bf16.msra.mxu1 %v2629_v48  ;;  %s2665_s26 = scalar_lea.vmem %s3261_s14, 128  ;;  %p2672_p1 = scmp.lt.s32.totalorder %s3261_s14, %s2670_s23 }
  0x24   : > { %2414 = vmatprep.subr.bf16.mxu1 %v2745_v1  ;;  %p2666_p12 = scmp.ne.s32.totalorder %s3261_s14, %s2665_s26  ;;  %p2673_p2 = scmp.lt.s32.totalorder %s2671_s1, %s2665_s26 }
  0x25   : > { %2407 = vmatpush3.bf16.msra.mxu0 %v2620_v6  ;;  %v2627_v6 = vld [vmem:[%s3312_s5 + $0x20] sm:$0xff]  }
  0x26   : > { %2420 = vmatprep.subr.bf16.mxu0 %v2745_v1  ;;  %p2667_p13 = pnand %p2666_p12, %p2850_p4  ;;  %p2674_p3 = por %p2673_p2, %p2672_p1 }
  0x27   : > { %2415 = vmatpush3.bf16.msra.mxu1 %v2630_v50 }
  0x28   : > { %2409 = vmatmul.mubr.msk.bf16.vlgmr.msra.gmra.mrb[4].mxu0 %vm511_vm1, %v2890_v5  ;;  %2428 = vmatprep.subr.bf16.mxu1 %v2745_v1  ;;  %p2668_p0 = pneg %p2667_p13 }
  0x29   : > { %2421 = vmatpush3.bf16.msra.mxu0 %v2621_v7  ;;  %2424 = vmatprep.mubr.msk.bf16.mxu0 %vm2746_vm0, %v2745_v1  ;;  %v2748_v7 = vmov 0  }
  0x2a   : > { %2422 = vmatprep.subr.bf16.mxu0 %v2745_v1  ;;  %2417 = vmatmul.mubr.msk.bf16.vlgmr.msra.gmra.mrb[4].mxu1 %vm511_vm1, %v2890_v5  ;;  %p2675_p5 = pnand %p2674_p3, %p2668_p0 }
  0x2b   : > { %2429 = vmatpush3.bf16.msra.mxu1 %v2631_v51  ;;  %2432 = vmatprep.mubr.msk.bf16.mxu1 %vm2746_vm0, %v2745_v1  ;;  %v2635_v51 = vld [vmem:[%s3314_s7 + $0x10] sm:$0xff]  }
  0x2c   : > { %2430 = vmatprep.subr.bf16.mxu1 %v2745_v1  ;;  %2615 = vset.pattern.permute.xlu0 %v2748_v7 }
  0x2d   : > { %2423 = vmatpush3.bf16.msra.mxu0 %v2622_v9  ;;  %2616 = vset.pattern.permute.xlu1 %v2748_v7  ;;  %v3044_v9 = vld [vmem:[#allocation3] sm:$0xff] }
  0x2e   : > { %2436 = vmatprep.subr.bf16.mxu0 %v2745_v1 }
  0x2f   : > { %2431 = vmatpush3.bf16.msra.mxu1 %v2632_v52 }
  0x30   : > { %2425 = vmatmul.mubr.msk.bf16.vlgmr.msra.gmra.mrb[8].mxu0 %vm511_vm1, %v2916_v10  ;;  %2442 = vmatprep.subr.bf16.mxu1 %v2745_v1 }
  0x31   : > { %2438 = vmatprep.mubr.msk.bf16.mxu0 %vm2746_vm0, %v2745_v1 }
  0x32   : > { %2433 = vmatmul.mubr.msk.bf16.vlgmr.msra.gmra.mrb[8].mxu1 %vm511_vm1, %v2916_v10 }
  0x33   : > { %2444 = vmatprep.mubr.msk.bf16.mxu1 %vm2746_vm0, %v2745_v1 }
  0xf3   : > { %v549_v14 = vpop.f32.mrb[0].mxu0  ;;  %v618_v41 = vpop.f32.mrb[0].mxu1 }
  0xf4   : > { %v550_v15 = vadd.f32 %v2215_v13, %v549_v14  ;;  %v2394_v16 = vpop.f32.mrb[1].mxu0  ;;  %v619_v42 = vadd.f32 %v2224_v40, %v618_v41  ;;  %v2402_v43 = vpop.f32.mrb[1].mxu1  ;;  %v2242_v14 = vld [vmem:[%s3311_s4 + $0x3] ss:$0 sm:$0xff] }
  0xf5   : > { %v552_v17 = vpop.f32.mrb[2].mxu0  ;;  %v621_v44 = vpop.f32.mrb[2].mxu1 }
  0xf6   : > { %v555_v18 = vmul.f32 0.35355338, %v550_v15  ;;  %v2395_v19 = vpop.f32.mrb[3].mxu0  ;;  %v624_v45 = vmul.f32 0.35355338, %v619_v42  ;;  %v2403_v46 = vpop.f32.mrb[3].mxu1 }
  0xf7   : > { %v2250_v19 = vld [vmem:[%s3315_s8] ss:$0 sm:$0xff]  ;;  %v2633_v44 = vld [vmem:[%s3312_s5 + $0x30] sm:$0xff]   ;;  %v2634_v46 = vld [vmem:[%s3312_s5 + $0x38] sm:$0xff]  }
  0xf8   : > { %v556_v20 = vpack.c.bf16 %v555_v18, %v555_v18  ;;  %v625_v47 = vpack.c.bf16 %v624_v45, %v624_v45 }
  0xfa   : > { %558 = vst.msk [vmem:[#allocation2] sm:$0xf] %vm557_vm3, %v556_v20  ;;  %627 = vst.msk [vmem:[#allocation2 + $0x4] sm:$0xf] %vm557_vm3, %v625_v47 }
  0xfb   : > { %v687_v22 = vpop.f32.mrb[4].mxu0 }
  0xfc   : > { %v688_v23 = vadd.f32 %v2233_v21, %v687_v22  ;;  %v2410_v24 = vpop.f32.mrb[5].mxu0 }
  0xfd   : > { %v690_v25 = vpop.f32.mrb[6].mxu0  ;;  %v756_v15 = vpop.f32.mrb[4].mxu1 }
  0xfe   : > { %v693_v26 = vmul.f32 0.35355338, %v688_v23  ;;  %v2411_v27 = vpop.f32.mrb[7].mxu0  ;;  %v757_v16 = vadd.f32 %v2242_v14, %v756_v15  ;;  %v2418_v17 = vpop.f32.mrb[5].mxu1 }
  0xff   : > { %v759_v18 = vpop.f32.mrb[6].mxu1 }
 0x100   : > { %v694_v28 = vpack.c.bf16 %v693_v26, %v693_v26  ;;  %v762_v20 = vmul.f32 0.35355338, %v757_v16  ;;  %v2419_v21 = vpop.f32.mrb[7].mxu1 }
 0x101   : > { %v913_v38 = vld [vmem:[#allocation2] sm:$0xf]  ;;  %v1178_v5 = vld [vmem:[#allocation2 + $0x4] sm:$0xf] }
 0x102   : > { %696 = vst.msk [vmem:[#allocation2 + $0x8] sm:$0xf] %vm557_vm3, %v694_v28  ;;  %v763_v23 = vpack.c.bf16 %v762_v20, %v762_v20 }
 0x103   : > { %v844_v30 = vpop.f32.mrb[8].mxu0 }
 0x104   : > { %v845_v31 = vadd.f32 %v2246_v29, %v844_v30  ;;  %v2426_v32 = vpop.f32.mrb[9].mxu0  ;;  %765 = vst.msk [vmem:[#allocation2 + $0xc] sm:$0xf] %vm557_vm3, %v763_v23 }
 0x105   : > { %v847_v33 = vpop.f32.mrb[10].mxu0  ;;  %v907_v22 = vpop.f32.mrb[8].mxu1 }
 0x106   : > { %v914_v34 = vpack.c.bf16 %v845_v31, %v845_v31  ;;  %v2427_v35 = vpop.f32.mrb[11].mxu0  ;;  %v908_v24 = vadd.f32 %v2250_v19, %v907_v22  ;;  %v2434_v25 = vpop.f32.mrb[9].mxu1  ;;  %v2270_v22 = vld [vmem:[%s3315_s8 + $0x1] ss:$0 sm:$0xff] }
 0x107   : > { %v910_v26 = vpop.f32.mrb[10].mxu1 }
 0x108   : > { %v920_v36 = vsel %vm775_vm2, %v914_v34, 0  ;;  %v996_v27 = vpack.c.bf16 %v908_v24, %v908_v24  ;;  %v2435_v28 = vpop.f32.mrb[11].mxu1 }
 0x109   : > { %2437 = vmatpush3.bf16.xpose.msra.mxu0 %v920_v36  ;;  %v2281_v36 = vld [vmem:[%s3313_s6 + $0x2] ss:$0 sm:$0xff]  ;;  %v1442_v45 = vld [vmem:[#allocation2 + $0x8] sm:$0xf] }
 0x10a   : > { %2448 = vmatprep.subr.bf16.mxu0 %v2745_v1  ;;  %v1002_v29 = vsel %vm1000_vm6, %v996_v27, 0 }
 0x10b   : > { %2443 = vmatpush3.bf16.msra.mxu1 %v1002_v29  ;;  %v1706_v14 = vld [vmem:[#allocation2 + $0xc] sm:$0xf] }
 0x10c   : > { %2456 = vmatprep.subr.bf16.mxu1 %v2745_v1 }
 0x110   : > { %2439 = vmatmul.mubr.msk.bf16.vlgmr.msra.gmra.mrb[12].mxu0 %vm775_vm2, %v913_v38 }
 0x111   : > { %2449 = vmatpush3.bf16.msra.mxu0 %v2625_v37  ;;  %2452 = vmatprep.mubr.msk.bf16.mxu0 %vm2746_vm0, %v2745_v1 }
 0x112   : > { %2450 = vmatprep.subr.bf16.mxu0 %v2745_v1 }
 0x115   : > { %2451 = vmatpush3.bf16.msra.mxu0 %v2626_v39 }
 0x116   : > { %2464 = vmatprep.subr.bf16.mxu0 %v2745_v1 }
 0x118   : > { %2453 = vmatmul.mubr.msk.bf16.vlgmr.msra.gmra.mrb[16].mxu0 %vm511_vm1, %v2916_v10 }
 0x119   : > { %2466 = vmatprep.mubr.msk.bf16.mxu0 %vm2746_vm0, %v2745_v1 }
 0x1e3   : > { %v956_v54 = vpop.f32.mrb[12].mxu0 }
 0x1e4   : > { %v3020_v55 = vsel %vm962_vm5, -1e+09, %v956_v54  ;;  %v2440_v56 = vpop.f32.mrb[13].mxu0  ;;  %v2636_v54 = vld [vmem:[%s3314_s7 + $0x18] sm:$0xff]  }
 0x1e5   : > { %v959_v57 = vpop.f32.mrb[14].mxu0  ;;  %v965_v58 = vsel %vm775_vm2, %v3020_v55, -inf }
 0x1e6   : > { %966 = vmax.xlane.f32.xlu0 %v965_v58  ;;  %v2441_v59 = vpop.f32.mrb[15].mxu0 }
 0x1eb   : > { %v1106_v61 = vpop.f32.mrb[16].mxu0 }
 0x1ec   : > { %v1107_v62 = vadd.f32 %v2261_v60, %v1106_v61  ;;  %v2454_v63 = vpop.f32.mrb[17].mxu0 }
 0x1ed   : > { %v1109_v0 = vpop.f32.mrb[18].mxu0 }
 0x1ee   : > { %v1179_v2 = vpack.c.bf16 %v1107_v62, %v1107_v62  ;;  %v2455_v3 = vpop.f32.mrb[19].mxu0 }
 0x1f0   : > { %v1184_v4 = vsel %vm775_vm2, %v1179_v2, 0  ;;  %v2301_v2 = vld [vmem:[%s3313_s6 + $0x3] ss:$0 sm:$0xff] }
 0x1f1   : > { %2465 = vmatpush3.bf16.xpose.msra.mxu0 %v1184_v4 }
 0x1f2   : > { %2476 = vmatprep.subr.bf16.mxu0 %v2745_v1 }
 0x1f8   : > { %2467 = vmatmul.mubr.msk.bf16.vlgmr.msra.gmra.mrb[20].mxu0 %vm775_vm2, %v1178_v5 }
 0x1f9   : > { %2477 = vmatpush3.bf16.msra.mxu0 %v2627_v6  ;;  %2480 = vmatprep.mubr.msk.bf16.mxu0 %vm2746_vm0, %v2745_v1 }
 0x1fa   : > { %2478 = vmatprep.subr.bf16.mxu0 %v2745_v1 }
 0x1fd   : > { %2479 = vmatpush3.bf16.msra.mxu0 %v2628_v8 }
 0x1fe   : > { %2492 = vmatprep.subr.bf16.mxu0 %v2745_v1 }
 0x200   : > { %2481 = vmatmul.mubr.msk.bf16.vlgmr.msra.gmra.mrb[24].mxu0 %vm511_vm1, %v2916_v10 }
 0x201   : > { %2494 = vmatprep.mubr.msk.bf16.mxu0 %vm2746_vm0, %v2745_v1 }
 0x273   : > { %v967_v11 = vpop.xlane.xlu0 %966 }
 0x274   : > { %v3047_v12 = vmax.f32 %v3044_v9, %v967_v11 }
 0x276   : > { %v969_v13 = vsub.f32 %v3044_v9, %v3047_v12  ;;  %1046 = vst.msk [vmem:[#allocation3] sm:$0xff] %vm766_vm4, %v3047_v12  ;;  %974 = vperm.xlu0 %2615, %v3047_v12  }
 0x2cb   : > { %v1220_v30 = vpop.f32.mrb[20].mxu0 }
 0x2cc   : > { %v3065_v31 = vsel %vm962_vm5, -1e+09, %v1220_v30  ;;  %v2468_v32 = vpop.f32.mrb[21].mxu0 }
 0x2cd   : > { %v1223_v33 = vpop.f32.mrb[22].mxu0  ;;  %v1229_v34 = vsel %vm775_vm2, %v3065_v31, -inf }
 0x2ce   : > { %1230 = vmax.xlane.f32.xlu1 %v1229_v34  ;;  %v2469_v35 = vpop.f32.mrb[23].mxu0  ;;  %v2638_v33 = vld [vmem:[%s3314_s7 + $0x28] sm:$0xff]   ;;  %v1492_v34 = vld [vmem:[#allocation3 + $0x10] sm:$0xff] }
 0x2d3   : > { %v1370_v37 = vpop.f32.mrb[24].mxu0 }
 0x2d4   : > { %v1371_v38 = vadd.f32 %v2281_v36, %v1370_v37  ;;  %v2482_v39 = vpop.f32.mrb[25].mxu0 }
 0x2d5   : > { %v1373_v40 = vpop.f32.mrb[26].mxu0 }
 0x2d6   : > { %v1443_v41 = vpack.c.bf16 %v1371_v38, %v1371_v38  ;;  %v2483_v42 = vpop.f32.mrb[27].mxu0 }
 0x2d8   : > { %v1448_v43 = vsel %vm775_vm2, %v1443_v41, 0 }
 0x2d9   : > { %2493 = vmatpush3.bf16.xpose.msra.mxu0 %v1448_v43 }
 0x2da   : > { %2504 = vmatprep.subr.bf16.mxu0 %v2745_v1 }
 0x2e0   : > { %2495 = vmatmul.mubr.msk.bf16.vlgmr.msra.gmra.mrb[28].mxu0 %vm775_vm2, %v1442_v45 }
 0x2e1   : > { %2505 = vmatpush3.bf16.msra.mxu0 %v2633_v44  ;;  %2508 = vmatprep.mubr.msk.bf16.mxu0 %vm2746_vm0, %v2745_v1 }
 0x2e2   : > { %2506 = vmatprep.subr.bf16.mxu0 %v2745_v1 }
 0x2e5   : > { %2507 = vmatpush3.bf16.msra.mxu0 %v2634_v46 }
 0x2e6   : > { %2520 = vmatprep.subr.bf16.mxu0 %v2745_v1 }
 0x2e8   : > { %2509 = vmatmul.mubr.msk.bf16.vlgmr.msra.gmra.mrb[32].mxu0 %vm511_vm1, %v2916_v10 }
 0x2e9   : > { %2522 = vmatprep.mubr.msk.bf16.mxu0 %vm2746_vm0, %v2745_v1 }
 0x2f5   : > { %v975_v47 = vpop.permute.xlu0 %974 }
 0x2f6   : > { %v977_v48 = vsub.f32 %v3020_v55, %v975_v47  ;;  %v3109_v55 = vld [vmem:[#allocation3 + $0x8] sm:$0xff] }
 0x2f8   : > { %v978_v49 = vmul.f32 1.442695, %v977_v48 }
 0x2fa   : > { %2641 = vpow2.f32 %v978_v49 }
 0x304   : > { %v3090_v50 = vpop.eup %2641 }
 0x305   : > { %v995_v52 = vpack.c.bf16 %v3090_v50, %v3090_v50  ;;  %v982_v44 = vsel %vm775_vm2, %v3090_v50, 0.0 }
 0x307   : > { %2445 = vmatmul.mubr.msk.bf16.vlgmr.msra.gmra.mrb[12].mxu1 %vm775_vm2, %v995_v52  ;;  %v2290_v52 = vld [vmem:[%s3315_s8 + $0x2] ss:$0 sm:$0xff] }
 0x308   : > { %2457 = vmatpush3.bf16.msra.mxu1 %v2635_v51  ;;  %2460 = vmatprep.mubr.msk.bf16.mxu1 %vm2746_vm0, %v2745_v1 }
 0x309   : > { %2458 = vmatprep.subr.bf16.mxu1 %v2745_v1 }
 0x30c   : > { %2459 = vmatpush3.bf16.msra.mxu1 %v2636_v54 }
 0x30d   : > { %2470 = vmatprep.subr.bf16.mxu1 %v2745_v1 }
 0x30f   : > { %2461 = vmatmul.mubr.msk.bf16.vlgmr.msra.gmra.mrb[16].mxu1 %vm511_vm1, %v2916_v10 }
 0x310   : > { %2472 = vmatprep.mubr.msk.bf16.mxu1 %vm2746_vm0, %v2745_v1 }
 0x35b   : > { %v1231_v56 = vpop.xlane.xlu1 %1230 }
 0x35c   : > { %v3112_v57 = vmax.f32 %v3109_v55, %v1231_v56 }
 0x35e   : > { %v1233_v58 = vsub.f32 %v3109_v55, %v3112_v57  ;;  %1310 = vst.msk [vmem:[#allocation3 + $0x8] sm:$0xff] %vm766_vm4, %v3112_v57  ;;  %1238 = vperm.xlu1 %2616, %v3112_v57  }
 0x3b3   : > { %v1484_v59 = vpop.f32.mrb[28].mxu0 }
 0x3b4   : > { %v3121_v60 = vsel %vm962_vm5, -1e+09, %v1484_v59  ;;  %v2496_v61 = vpop.f32.mrb[29].mxu0 }
 0x3b5   : > { %v1487_v62 = vpop.f32.mrb[30].mxu0  ;;  %v1493_v63 = vsel %vm775_vm2, %v3121_v60, -inf }
 0x3b6   : > { %1494 = vmax.xlane.f32.xlu1 %v1493_v63  ;;  %v2497_v0 = vpop.f32.mrb[31].mxu0 }
 0x3bb   : > { %v1634_v3 = vpop.f32.mrb[32].mxu0 }
 0x3bc   : > { %v1635_v4 = vadd.f32 %v2301_v2, %v1634_v3  ;;  %v2510_v5 = vpop.f32.mrb[33].mxu0 }
 0x3bd   : > { %v1637_v6 = vpop.f32.mrb[34].mxu0  ;;  %v970_v5 = vmul.f32 1.442695, %v969_v13 }
 0x3be   : > { %v1707_v7 = vpack.c.bf16 %v1635_v4, %v1635_v4  ;;  %v2511_v8 = vpop.f32.mrb[35].mxu0  ;;  %v2640_v4 = vld [vmem:[%s3314_s7 + $0x38] sm:$0xff]   ;;  %v1756_v6 = vld [vmem:[#allocation3 + $0x18] sm:$0xff] }
 0x3c0   : > { %v1712_v11 = vsel %vm775_vm2, %v1707_v7, 0 }
 0x3c1   : > { %2521 = vmatpush3.bf16.xpose.msra.mxu0 %v1712_v11  ;;  %v980_v11 = vld [vmem:[#allocation4] sm:$0xff] }
 0x3c2   : > { %2532 = vmatprep.subr.bf16.mxu0 %v2745_v1 }
 0x3c8   : > { %2523 = vmatmul.mubr.msk.bf16.vlgmr.msra.gmra.mrb[36].mxu0 %vm775_vm2, %v1706_v14 }
 0x3c9   : > { %2534 = vmatprep.mubr.msk.bf16.mxu0 %vm2746_vm0, %v2745_v1 }
 0x3da   : > { %v3133_v15 = vpop.f32.mrb[12].mxu1 }
 0x3db   : > { %v2446_v16 = vpop.f32.mrb[13].mxu1 }
 0x3dc   : > { %v1041_v17 = vpop.f32.mrb[14].mxu1 }
 0x3dd   : > { %v2447_v18 = vpop.f32.mrb[15].mxu1  ;;  %v1239_v19 = vpop.permute.xlu1 %1238 }
 0x3de   : > { %v1241_v20 = vsub.f32 %v3065_v31, %v1239_v19  ;;  %v2637_v31 = vld [vmem:[%s3314_s7 + $0x20] sm:$0xff]  }
 0x3e0   : > { %v1242_v21 = vmul.f32 1.442695, %v1241_v20  ;;  %v1509_v20 = vld [vmem:[#allocation4 + $0x10] sm:$0xff] }
 0x3e2   : > { %2643 = vpow2.f32 %v1242_v21  ;;  %v1171_v23 = vpop.f32.mrb[16].mxu1 }
 0x3e3   : > { %v1172_v24 = vadd.f32 %v2270_v22, %v1171_v23  ;;  %v2462_v25 = vpop.f32.mrb[17].mxu1 }
 0x3e4   : > { %v1174_v26 = vpop.f32.mrb[18].mxu1 }
 0x3e5   : > { %v1261_v27 = vpack.c.bf16 %v1172_v24, %v1172_v24  ;;  %v2463_v28 = vpop.f32.mrb[19].mxu1 }
 0x3e7   : > { %v1266_v29 = vsel %vm1000_vm6, %v1261_v27, 0 }
 0x3e8   : > { %2471 = vmatpush3.bf16.msra.mxu1 %v1266_v29 }
 0x3e9   : > { %2484 = vmatprep.subr.bf16.mxu1 %v2745_v1 }
 0x3ec   : > { %v3141_v30 = vpop.eup %2643 }
 0x3ed   : > { %v1260_v32 = vpack.c.bf16 %v3141_v30, %v3141_v30  ;;  %v1247_v9 = vsel %vm775_vm2, %v3141_v30, 0.0 }
 0x3ef   : > { %2473 = vmatmul.mubr.msk.bf16.vlgmr.msra.gmra.mrb[20].mxu1 %vm775_vm2, %v1260_v32  ;;  %v2310_v32 = vld [vmem:[%s3315_s8 + $0x3] ss:$0 sm:$0xff] }
 0x3f0   : > { %2485 = vmatpush3.bf16.msra.mxu1 %v2637_v31  ;;  %2488 = vmatprep.mubr.msk.bf16.mxu1 %vm2746_vm0, %v2745_v1 }
 0x3f1   : > { %2486 = vmatprep.subr.bf16.mxu1 %v2745_v1 }
 0x3f4   : > { %2487 = vmatpush3.bf16.msra.mxu1 %v2638_v33 }
 0x3f5   : > { %2498 = vmatprep.subr.bf16.mxu1 %v2745_v1 }
 0x3f7   : > { %2489 = vmatmul.mubr.msk.bf16.vlgmr.msra.gmra.mrb[24].mxu1 %vm511_vm1, %v2916_v10 }
 0x3f8   : > { %2500 = vmatprep.mubr.msk.bf16.mxu1 %vm2746_vm0, %v2745_v1 }
 0x443   : > { %v1495_v35 = vpop.xlane.xlu1 %1494 }
 0x444   : > { %v1496_v36 = vmax.f32 %v1492_v34, %v1495_v35 }
 0x446   : > { %v1497_v37 = vsub.f32 %v1492_v34, %v1496_v36  ;;  %1574 = vst.msk [vmem:[#allocation3 + $0x10] sm:$0xff] %vm766_vm4, %v1496_v36  ;;  %1502 = vperm.xlu0 %2615, %v1496_v36  }
 0x448   : > { %v1498_v19 = vmul.f32 1.442695, %v1497_v37 }
 0x49b   : > { %v1748_v38 = vpop.f32.mrb[36].mxu0 }
 0x49c   : > { %v3163_v39 = vsel %vm962_vm5, -1e+09, %v1748_v38  ;;  %v2524_v40 = vpop.f32.mrb[37].mxu0 }
 0x49d   : > { %v1751_v41 = vpop.f32.mrb[38].mxu0  ;;  %v1757_v42 = vsel %vm775_vm2, %v3163_v39, -inf }
 0x49e   : > { %1758 = vmax.xlane.f32.xlu0 %v1757_v42  ;;  %v2525_v43 = vpop.f32.mrb[39].mxu0 }
 0x4a2   : > { %983 = vadd.xlane.f32.xlu0 %v982_v44 }
 0x4c2   : > { %v3169_v45 = vpop.f32.mrb[20].mxu1 }
 0x4c3   : > { %v2474_v46 = vpop.f32.mrb[21].mxu1 }
 0x4c4   : > { %v1305_v47 = vpop.f32.mrb[22].mxu1  ;;  %v1234_v46 = vmul.f32 1.442695, %v1233_v58 }
 0x4c5   : > { %v2475_v48 = vpop.f32.mrb[23].mxu1  ;;  %v1503_v49 = vpop.permute.xlu0 %1502 }
 0x4c6   : > { %v1505_v53 = vsub.f32 %v3121_v60, %v1503_v49  ;;  %v2639_v60 = vld [vmem:[%s3314_s7 + $0x30] sm:$0xff]  }
 0x4c8   : > { %v1506_v51 = vmul.f32 1.442695, %v1505_v53  ;;  %v1245_v53 = vld [vmem:[#allocation4 + $0x8] sm:$0xff] }
 0x4ca   : > { %2645 = vpow2.f32 %v1506_v51  ;;  %v1435_v54 = vpop.f32.mrb[24].mxu1 }
 0x4cb   : > { %v1436_v56 = vadd.f32 %v2290_v52, %v1435_v54  ;;  %v2490_v59 = vpop.f32.mrb[25].mxu1  ;;  %2647 = vpow2.f32 %v970_v5 }
 0x4cc   : > { %v1438_v61 = vpop.f32.mrb[26].mxu1  ;;  %2649 = vpow2.f32 %v1498_v19 }
 0x4cd   : > { %v1525_v50 = vpack.c.bf16 %v1436_v56, %v1436_v56  ;;  %v2491_v62 = vpop.f32.mrb[27].mxu1  ;;  %v988_v56 = vld [vmem:[#allocation5] sm:$0xff] }
 0x4cf   : > { %v1530_v63 = vsel %vm1000_vm6, %v1525_v50, 0 }
 0x4d0   : > { %2499 = vmatpush3.bf16.msra.mxu1 %v1530_v63 }
 0x4d1   : > { %2512 = vmatprep.subr.bf16.mxu1 %v2745_v1 }
 0x4d4   : > { %v2646_v0 = vpop.eup %2645 }
 0x4d5   : > { %v1511_v2 = vsel %vm775_vm2, %v2646_v0, 0.0  ;;  %v1524_v3 = vpack.c.bf16 %v2646_v0, %v2646_v0  ;;  %v2648_v7 = vpop.eup %2647 }
 0x4d6   : > { %1512 = vadd.xlane.f32.xlu0 %v1511_v2  ;;  %v981_v17 = vmul.f32 %v2648_v7, %v980_v11  ;;  %v2650_v13 = vpop.eup %2649  ;;  %v2316_v2 = vld [vmem:[%s3316_s9 + $0x4] sm:$0xf] }
 0x4d7   : > { %2501 = vmatmul.mubr.msk.bf16.vlgmr.msra.gmra.mrb[28].mxu1 %vm775_vm2, %v1524_v3  ;;  %v1510_v21 = vmul.f32 %v2650_v13, %v1509_v20 }
 0x4d8   : > { %2513 = vmatpush3.bf16.msra.mxu1 %v2639_v60  ;;  %2516 = vmatprep.mubr.msk.bf16.mxu1 %vm2746_vm0, %v2745_v1 }
 0x4d9   : > { %2514 = vmatprep.subr.bf16.mxu1 %v2745_v1 }
 0x4dc   : > { %2515 = vmatpush3.bf16.msra.mxu1 %v2640_v4  ;;  %v1773_v4 = vld [vmem:[#allocation4 + $0x18] sm:$0xff] }
 0x4dd   : > { %2526 = vmatprep.subr.bf16.mxu1 %v2745_v1 }
 0x4df   : > { %2517 = vmatmul.mubr.msk.bf16.vlgmr.msra.gmra.mrb[32].mxu1 %vm511_vm1, %v2916_v10 }
 0x4e0   : > { %2528 = vmatprep.mubr.msk.bf16.mxu1 %vm2746_vm0, %v2745_v1 }
 0x52b   : > { %v1759_v8 = vpop.xlane.xlu0 %1758 }
 0x52c   : > { %v1760_v14 = vmax.f32 %v1756_v6, %v1759_v8 }
 0x52e   : > { %v1761_v16 = vsub.f32 %v1756_v6, %v1760_v14  ;;  %1838 = vst.msk [vmem:[#allocation3 + $0x18] sm:$0xff] %vm766_vm4, %v1760_v14  ;;  %1766 = vperm.xlu1 %2616, %v1760_v14   ;;  %v2321_v6 = vld [vmem:[%s3316_s9 + $0xc] sm:$0xf]  ;;  %v1253_v14 = vld [vmem:[#allocation5 + $0x8] sm:$0xff] }
 0x52f   : > { %v984_v18 = vpop.xlane.xlu0 %983  ;;  %v2032_v8 = vsel %vm1000_vm6, %v2321_v6, 0 }
 0x530   : > { %v985_v10 = vadd.f32 %v984_v18, %v981_v17  ;;  %v1762_v47 = vmul.f32 1.442695, %v1761_v16  ;;  %v1517_v18 = vld [vmem:[#allocation5 + $0x10] sm:$0xff] }
 0x532   : > { %987 = vst.msk [vmem:[#allocation4] sm:$0xff] %vm766_vm4, %v985_v10 }
 0x539   : > { %v1843_v12 = vld [vmem:[#allocation4] sm:$0xff] }
 0x53a   : > { %2651 = vrcp.f32 %v1843_v12 }
 0x544   : > { %v2652_v24 = vpop.eup %2651 }
 0x552   : > { %1248 = vadd.xlane.f32.xlu1 %v1247_v9 }
 0x563   : > { %991 = vperm.xlu1 %2616, %v2648_v7   ;;  %v1513_v22 = vpop.xlane.xlu0 %1512 }
 0x564   : > { %v1514_v23 = vadd.f32 %v1513_v22, %v1510_v21 }
 0x566   : > { %1515 = vst.msk [vmem:[#allocation4 + $0x10] sm:$0xff] %vm766_vm4, %v1514_v23 }
 0x567   : > { %1847 = vperm.xlu1 %2616, %v2652_v24   ;;  %v2319_v24 = vld [vmem:[%s3316_s9 + $0x8] sm:$0xf] }
 0x56d   : > { %v1958_v58 = vld [vmem:[#allocation4 + $0x10] sm:$0xff] }
 0x5aa   : > { %v3201_v25 = vpop.f32.mrb[28].mxu1 }
 0x5ab   : > { %v2502_v26 = vpop.f32.mrb[29].mxu1 }
 0x5ac   : > { %v1569_v27 = vpop.f32.mrb[30].mxu1 }
 0x5ad   : > { %v2503_v28 = vpop.f32.mrb[31].mxu1  ;;  %v1767_v29 = vpop.permute.xlu1 %1766  ;;  %v1973_v27 = vsel %vm1000_vm6, %v2319_v24, 0 }
 0x5ae   : > { %v1769_v30 = vsub.f32 %v3163_v39, %v1767_v29  ;;  %v1852_v39 = vld [vmem:[%s3316_s9] sm:$0xf] }
 0x5af   : > { %v1915_v44 = vsel %vm1000_vm6, %v1852_v39, 0 }
 0x5b0   : > { %v1770_v31 = vmul.f32 1.442695, %v1769_v30 }
 0x5b2   : > { %2653 = vpow2.f32 %v1770_v31  ;;  %v1699_v33 = vpop.f32.mrb[32].mxu1  ;;  %v1781_v31 = vld [vmem:[#allocation5 + $0x18] sm:$0xff] }
 0x5b3   : > { %v1700_v34 = vadd.f32 %v2310_v32, %v1699_v33  ;;  %v2518_v35 = vpop.f32.mrb[33].mxu1  ;;  %2655 = vpow2.f32 %v1234_v46 }
 0x5b4   : > { %v1702_v36 = vpop.f32.mrb[34].mxu1  ;;  %2657 = vpow2.f32 %v1762_v47 }
 0x5b5   : > { %v1789_v37 = vpack.c.bf16 %v1700_v34, %v1700_v34  ;;  %v2519_v38 = vpop.f32.mrb[35].mxu1 }
 0x5b7   : > { %v1794_v40 = vsel %vm1000_vm6, %v1789_v37, 0 }
 0x5b8   : > { %2527 = vmatpush3.bf16.msra.mxu1 %v1794_v40 }
 0x5b9   : > { %2538 = vmatprep.subr.bf16.mxu1 %v2745_v1 }
 0x5bc   : > { %v2654_v41 = vpop.eup %2653 }
 0x5bd   : > { %v1775_v42 = vsel %vm775_vm2, %v2654_v41, 0.0  ;;  %v1788_v43 = vpack.c.bf16 %v2654_v41, %v2654_v41  ;;  %v2656_v48 = vpop.eup %2655 }
 0x5be   : > { %1776 = vadd.xlane.f32.xlu0 %v1775_v42  ;;  %v2658_v49 = vpop.eup %2657  ;;  %v1246_v51 = vmul.f32 %v2656_v48, %v1245_v53 }
 0x5bf   : > { %2529 = vmatmul.mubr.msk.bf16.vlgmr.msra.gmra.mrb[36].mxu1 %vm775_vm2, %v1788_v43  ;;  %v1774_v5 = vmul.f32 %v2658_v49, %v1773_v4 }
 0x5c0   : > { %2539 = vmatpush3.bf16.msra.mxu1 %v1915_v44  ;;  %2540 = vmatprep.mubr.msk.bf16.mxu1 %vm2746_vm0, %v2745_v1 }
 0x5c1   : > { %2550 = vmatprep.subr.bf16.mxu1 %v2745_v1 }
 0x5d4   : > { %1256 = vperm.xlu0 %2615, %v2656_v48  }
 0x5d8   : > { %1520 = vperm.xlu0 %2615, %v2650_v13  }
 0x5dc   : > { %1784 = vperm.xlu0 %2615, %v2658_v49  }
 0x5df   : > { %v1249_v52 = vpop.xlane.xlu1 %1248 }
 0x5e0   : > { %v1250_v54 = vadd.f32 %v1249_v52, %v1246_v51 }
 0x5e2   : > { %1251 = vst.msk [vmem:[#allocation4 + $0x8] sm:$0xff] %vm766_vm4, %v1250_v54 }
 0x5e3   : > { %v992_v59 = vpop.permute.xlu1 %991 }
 0x5e4   : > { %v994_v61 = vmul.f32 %v992_v59, %v988_v56 }
 0x5e6   : > { %v1044_v55 = vadd.f32 %v3133_v15, %v994_v61  ;;  %v1869_v15 = vsel %vm1000_vm6, %v2316_v2, 0 }
 0x5e7   : > { %v1848_v62 = vpop.permute.xlu1 %1847  ;;  %2533 = vmatpush3.bf16.msra.mxu0 %v1869_v15 }
 0x5e8   : > { %1045 = vst.msk [vmem:[#allocation5] sm:$0xff] %vm775_vm2, %v1044_v55  ;;  %2544 = vmatprep.subr.bf16.mxu0 %v2745_v1  ;;  %v2323_v55 = vld [vmem:[%s3317_s10] ss:$0 sm:$0xff] }
 0x5e9   : > { %v1854_v57 = vld [vmem:[#allocation4 + $0x8] sm:$0xff] }
 0x5ea   : > { %2659 = vrcp.f32 %v1854_v57 }
 0x5eb   : > { %2661 = vrcp.f32 %v1958_v58 }
 0x5ef   : > { %v1842_v50 = vld [vmem:[#allocation5] sm:$0xff] }
 0x5f0   : > { %v1850_v63 = vmul.f32 %v1848_v62, %v1842_v50 }
 0x5f2   : > { %v1851_v0 = vpack.c.bf16 %v1850_v63, %v1850_v63 }
 0x5f4   : > { %v2660_v60 = vpop.eup %2659  ;;  %2541 = vmatmul.mubr.msk.bf16.vlgmr.msra.gmra.mrb[40].mxu1 %vm775_vm2, %v1851_v0 }
 0x5f5   : > { %1858 = vperm.xlu0 %2615, %v2660_v60   ;;  %2552 = vmatprep.mubr.msk.bf16.mxu1 %vm2746_vm0, %v2745_v1  ;;  %v2662_v3 = vpop.eup %2661 }
 0x5f6   : > { %2551 = vmatpush3.bf16.msra.mxu1 %v2032_v8 }
 0x5f9   : > { %1962 = vperm.xlu0 %2615, %v2662_v3  }
 0x64b   : > { %v1777_v7 = vpop.xlane.xlu0 %1776 }
 0x64c   : > { %v1778_v11 = vadd.f32 %v1777_v7, %v1774_v5 }
 0x64e   : > { %1779 = vst.msk [vmem:[#allocation4 + $0x18] sm:$0xff] %vm766_vm4, %v1778_v11 }
 0x653   : > { %v1257_v16 = vpop.permute.xlu0 %1256 }
 0x654   : > { %v1259_v17 = vmul.f32 %v1257_v16, %v1253_v14 }
 0x655   : > { %v2017_v10 = vld [vmem:[#allocation4 + $0x18] sm:$0xff] }
 0x656   : > { %v1308_v19 = vadd.f32 %v3169_v45, %v1259_v17  ;;  %2663 = vrcp.f32 %v2017_v10 }
 0x657   : > { %v1521_v9 = vpop.permute.xlu0 %1520 }
 0x658   : > { %1309 = vst.msk [vmem:[#allocation5 + $0x8] sm:$0xff] %vm775_vm2, %v1308_v19  ;;  %v1523_v12 = vmul.f32 %v1521_v9, %v1517_v18 }
 0x65a   : > { %v1572_v13 = vadd.f32 %v3201_v25, %v1523_v12 }
 0x65b   : > { %v1785_v21 = vpop.permute.xlu0 %1784 }
 0x65c   : > { %1573 = vst.msk [vmem:[#allocation5 + $0x10] sm:$0xff] %vm775_vm2, %v1572_v13  ;;  %v1787_v32 = vmul.f32 %v1785_v21, %v1781_v31 }
 0x65f   : > { %v1853_v22 = vld [vmem:[#allocation5 + $0x8] sm:$0xff] }
 0x660   : > { %v2664_v20 = vpop.eup %2663 }
 0x661   : > { %2021 = vperm.xlu1 %2616, %v2664_v20  }
 0x663   : > { %v1957_v29 = vld [vmem:[#allocation5 + $0x10] sm:$0xff] }
 0x674   : > { %v1859_v23 = vpop.permute.xlu0 %1858 }
 0x675   : > { %v1861_v26 = vmul.f32 %v1859_v23, %v1853_v22 }
 0x677   : > { %v1862_v45 = vpack.c.bf16 %v1861_v26, %v1861_v26 }
 0x678   : > { %v1963_v28 = vpop.permute.xlu0 %1962 }
 0x679   : > { %2535 = vmatmul.mubr.msk.bf16.vlgmr.msra.gmra.mrb[40].mxu0 %vm775_vm2, %v1862_v45  ;;  %v1965_v25 = vmul.f32 %v1963_v28, %v1957_v29 }
 0x67a   : > { %2545 = vmatpush3.bf16.msra.mxu0 %v1973_v27  ;;  %2546 = vmatprep.mubr.msk.bf16.mxu0 %vm2746_vm0, %v2745_v1 }
 0x67b   : > { %v1966_v30 = vpack.c.bf16 %v1965_v25, %v1965_v25 }
 0x681   : > { %2547 = vmatmul.mubr.msk.bf16.vlgmr.msra.gmra.mrb[44].mxu0 %vm775_vm2, %v1966_v30 }
 0x692   : > { %v1830_v33 = vpop.f32.mrb[36].mxu1 }
 0x693   : > { %v1836_v34 = vadd.f32 %v1830_v33, %v1787_v32  ;;  %v2530_v35 = vpop.f32.mrb[37].mxu1 }
 0x694   : > { %v1833_v36 = vpop.f32.mrb[38].mxu1 }
 0x695   : > { %1837 = vst.msk [vmem:[#allocation5 + $0x18] sm:$0xff] %vm775_vm2, %v1836_v34  ;;  %v2531_v37 = vpop.f32.mrb[39].mxu1 }
 0x69c   : > { %v2016_v1 = vld [vmem:[#allocation5 + $0x18] sm:$0xff] }
 0x6c7   : > { %v1951_v38 = vpop.f32.mrb[40].mxu1 }
 0x6c8   : > { %v2542_v40 = vpop.f32.mrb[41].mxu1 }
 0x6c9   : > { %v1954_v39 = vpop.f32.mrb[42].mxu1 }
 0x6ca   : > { %v2543_v41 = vpop.f32.mrb[43].mxu1 }
 0x6e0   : > { %v2022_v42 = vpop.permute.xlu1 %2021 }
 0x6e1   : > { %v2024_v43 = vmul.f32 %v2022_v42, %v2016_v1 }
 0x6e3   : > { %v2025_v44 = vpack.c.bf16 %v2024_v43, %v2024_v43 }
 0x6e5   : > { %2553 = vmatmul.mubr.msk.bf16.vlgmr.msra.gmra.mrb[44].mxu1 %vm775_vm2, %v2025_v44 }
 0x74c   : > { %v1905_v46 = vpop.f32.mrb[40].mxu0 }
 0x74d   : > { %v1952_v47 = vadd.f32 %v1951_v38, %v1905_v46  ;;  %v2536_v48 = vpop.f32.mrb[41].mxu0 }
 0x74e   : > { %v1908_v49 = vpop.f32.mrb[42].mxu0 }
 0x74f   : > { %v2537_v53 = vpop.f32.mrb[43].mxu0 }
 0x754   : > { %v2009_v51 = vpop.f32.mrb[44].mxu0 }
 0x755   : > { %v2015_v52 = vadd.f32 %v2009_v51, %v1952_v47  ;;  %v2548_v54 = vpop.f32.mrb[45].mxu0 }
 0x756   : > { %v2012_v56 = vpop.f32.mrb[46].mxu0 }
 0x757   : > { %v2549_v59 = vpop.f32.mrb[47].mxu0 }
 0x7b8   : > { %v2068_v61 = vpop.f32.mrb[44].mxu1 }
 0x7b9   : > { %v2074_v57 = vadd.f32 %v2068_v61, %v2015_v52  ;;  %v2554_v58 = vpop.f32.mrb[45].mxu1 }
 0x7ba   : > { %v2071_v50 = vpop.f32.mrb[46].mxu1 }
 0x7bb   : > { %v2082_v62 = vadd.f32 %v2323_v55, %v2074_v57  ;;  %v2555_v63 = vpop.f32.mrb[47].mxu1 }
 0x7bd   : > { %2083 = vst.msk [vmem:[%s456_s13] sm:$0xff] %vm511_vm1, %v2082_v62 }
 0x7be   : > { %2678 = shalt.err (!%p2675_p5)
}
 0x7bf   : > { %s2679_s24 = scalar_lea.hbm %s3259_s0, 128  ;;  %s2683_s15 = scalar_lea.hbm %s3318_s11, 256 }
 0x7c0   : > { %p2680_p6 = scmp.ne.s32.totalorder %s3259_s0, %s2679_s24  ;;  %p2684_p10 = scmp.lt.u32.totalorder %s3259_s0, %s3318_s11 }
 0x7c1   : > { %p2685_p11 = scmp.lt.u32.totalorder %s2683_s15, %s2679_s24  ;;  %p2687_p13 = scmp.lt.u32.totalorder %s2679_s24, %s3259_s0 }
 0x7c2   : > { %p2681_p7 = pnand %p2680_p6, %p2850_p4 }
 0x7c3   : > { %p2686_p12 = por %p2685_p11, %p2684_p10 }
 0x7c4   : > { %p2682_p9 = pneg %p2681_p7 }
 0x7c5   : > { %p2688_p0 = por %p2687_p13, %p2686_p12 }
 0x7c7   : > { %p2689_p1 = pnand %p2688_p0, %p2682_p9 }
 0x7c9   : > { %2692 = shalt.err (!%p2689_p1)
}
 0x7ca   : > { %2556 = dma.vmem_to_hbm [thread:$0]  (%p2850_p4), %s3261_s14, 128, %s3259_s0, %s2085_s20  }
 0x7cb PF: > { %p2562_p2 = scmp.ge.s32.totalorder %s2743_s22, 2  ;;  %s2111_s1 = sand.u32 1, %s2723_s17  }
 0x7cc   : > { %s2112_s26 = scalar_lea.sflag [#allocation7], %s2111_s1 }
 0x7cd   : > { %p2559_p3 = pnand %p2562_p2, %p2857_p8 }
 0x7cf   : > { %2718 = dma.done.wait (!%p2559_p3), %s2112_s26, 128  }
 0x7d0   : > { %2720 = vsyncadd (!%p2559_p3), %s2112_s26, 4294967168  ;;  %s24_s22 = sadd.s32 1, %s2743_s22   ;;  %s3325_s17 = smov %s2727_s18 }
 0x7d1   : > { %p21_p5 = scmp.ge.s32.totalorder %s24_s22, 4   ;;  %s3326_s18 = smov %s2731_s19 }
 0x7d2   : > { %s3327_s19 = smov %s2863_s30  ;;  %s3328_s20 = smov %s2739_s21 }
 0x7d3   : > { %s3329_s21 = smov %s3331_s25  ;;  %23 = sbr.rel (!%p21_p5) target bundleno = 7 (0x7), region = 149 }
 0x7da   :  { %2117 = vsyncpa [#allocation7], 1 }
 0x7db   :  { %2119 = vsyncpa [#allocation7 + $0x1], 1 }

</bundles_post_ra>
